<compile_context>
chip_gen: v6e
topology: v6e:2x2x1
jax: 0.10.0
libtpu: 0.0.40
codegen_flags: <defaults>
</compile_context>

<pallas_src>
import jax
import jax.numpy as jnp
from jax.experimental import pallas as pl
from jax.experimental.pallas import tpu as pltpu


_SMALL_INPUT_THRESHOLD = 1 << 18  # below this, pallas_call launch overhead dominates


def _swish_kernel(x_ref, o_ref):
    x = x_ref[...]
    # Compute in f32 (required on v5e: no bf16 VPU/EUP), cast back to input dtype.
    xf = x.astype(jnp.float32)
    o_ref[...] = (xf * jax.nn.sigmoid(xf)).astype(o_ref.dtype)


def _plain_swish(x):
    xf = x.astype(jnp.float32)
    return (xf * jax.nn.sigmoid(xf)).astype(x.dtype)


def swish(x, *, target_block_bytes=2 * 1024 * 1024):
    """Elementwise Swish. Large lane-divisible inputs use the Pallas kernel;
    tiny or raggedly-sized inputs fall back to plain fused XLA elementwise."""
    n = x.size
    if n < _SMALL_INPUT_THRESHOLD:
        return _plain_swish(x)

    # Widest lane count (multiple of 128) that divides n -> unmasked, lane-dense
    # stores and no padding copy.
    lanes = None
    for cand in (2048, 1024, 512, 256, 128):
        if n % cand == 0:
            lanes = cand
            break
    if lanes is None:
        # Ragged total size (rare for conv activations): avoid a full-array pad copy.
        return _plain_swish(x)

    rows = n // lanes
    itemsize = jnp.dtype(x.dtype).itemsize

    # ~2 MiB blocks: past the per-grid-step-overhead knee (~85% of HBM roofline),
    # and 2 arrays x 2 pipeline buffers x 2 MiB stays well inside v7x's 32 MiB
    # scoped VMEM default. tile_rows kept a multiple of 8 (sublane alignment).
    tile_rows = max(8, (target_block_bytes // (lanes * itemsize)) // 8 * 8)
    tile_rows = min(tile_rows, ((rows + 7) // 8) * 8)
    # Keep >= 2 grid steps so the single "parallel" axis can be sharded across
    # both TensorCores on v7x.
    if pl.cdiv(rows, tile_rows) < 2:
        tile_rows = max(8, ((pl.cdiv(rows, 2) + 7) // 8) * 8)

    grid = (pl.cdiv(rows, tile_rows),)

    # Free for contiguous arrays: no pad, no copy. Ragged last row-block is
    # handled by Pallas (masked writes), correct for a pure elementwise op.
    x2d = x.reshape(rows, lanes)

    out2d = pl.pallas_call(
        _swish_kernel,
        out_shape=jax.ShapeDtypeStruct((rows, lanes), x.dtype),
        grid_spec=pltpu.PrefetchScalarGridSpec(
            num_scalar_prefetch=0,
            grid=grid,
            in_specs=[pl.BlockSpec((tile_rows, lanes), lambda i: (i, 0))],
            out_specs=pl.BlockSpec((tile_rows, lanes), lambda i: (i, 0)),
        ),
        compiler_params=pltpu.CompilerParams(
            dimension_semantics=("parallel",),
        ),
    )(x2d)

    return out2d.reshape(x.shape)


if __name__ == "__main__":
    key = jax.random.PRNGKey(0)
    k_small, k_big = jax.random.split(key)

    # Small NCHW input consistent with the PyTorch module (exercises the
    # small-input fallback path).
    x_small = jax.random.normal(k_small, (2, 4, 16, 16), dtype=jnp.float32)
    y_small = swish(x_small)
    jax.block_until_ready(y_small)
    ref_small = x_small * jax.nn.sigmoid(x_small)
    assert y_small.shape == x_small.shape and y_small.dtype == x_small.dtype
    assert jnp.allclose(y_small, ref_small, atol=1e-6, rtol=1e-6)

    # Larger activation that goes through the Pallas kernel path (f32).
    x_big = jax.random.normal(k_big, (4, 16, 64, 64), dtype=jnp.float32)
    y_big = swish(x_big)
    jax.block_until_ready(y_big)
    ref_big = x_big * jax.nn.sigmoid(x_big)
    assert y_big.shape == x_big.shape and y_big.dtype == x_big.dtype
    assert jnp.allclose(y_big, ref_big, atol=1e-6, rtol=1e-6)

    # bf16 case through the Pallas path (f32 internal compute, bf16 in/out).
    x_bf16 = x_big.astype(jnp.bfloat16)
    y_bf16 = swish(x_bf16)
    jax.block_until_ready(y_bf16)
    ref_bf16 = (x_bf16.astype(jnp.float32)
                * jax.nn.sigmoid(x_bf16.astype(jnp.float32))).astype(jnp.bfloat16)
    assert y_bf16.shape == x_bf16.shape and y_bf16.dtype == jnp.bfloat16
    assert jnp.allclose(y_bf16.astype(jnp.float32), ref_bf16.astype(jnp.float32),
                        atol=2e-2, rtol=2e-2)

    print("KERNEL_OK")
</pallas_src>

<mosaic_0001>
module attributes {stable_mosaic.version = 11 : i64} {
  func.func @_swish_kernel(%arg0: i32, %arg1: memref<64x2048xf32, #tpu.memory_space<vmem>>, %arg2: memref<64x2048xf32, #tpu.memory_space<vmem>>) attributes {dimension_semantics = [#tpu.dimension_semantics<parallel>], iteration_bounds = array<i64: 2>, scalar_prefetch = 0 : i64, scratch_operands = 0 : i64, tpu.core_type = #tpu.core_type<tc>, window_params = [{transform_indices = @transform_0, window_bounds = array<i64: 64, 2048>}, {transform_indices = @transform_1, window_bounds = array<i64: 64, 2048>}]} {
    %c0 = arith.constant 0 : index
    %c0_0 = arith.constant 0 : index
    %0 = vector.load %arg1[%c0, %c0_0] : memref<64x2048xf32, #tpu.memory_space<vmem>>, vector<64x2048xf32>
    %1 = arith.negf %0 : vector<64x2048xf32>
    %2 = math.exp %1 : vector<64x2048xf32>
    %cst = arith.constant 1.000000e+00 : f32
    %3 = vector.broadcast %cst : f32 to vector<64x2048xf32>
    %4 = arith.addf %3, %2 : vector<64x2048xf32>
    %5 = arith.divf %3, %4 : vector<64x2048xf32>
    %6 = arith.mulf %0, %5 : vector<64x2048xf32>
    %c0_1 = arith.constant 0 : index
    %c0_2 = arith.constant 0 : index
    %7 = vector.load %arg2[%c0_1, %c0_2] : memref<64x2048xf32, #tpu.memory_space<vmem>>, vector<64x2048xf32>
    tpu.vector_store %arg2[%c0_1, %c0_2], %6 {strides = array<i32>} : memref<64x2048xf32, #tpu.memory_space<vmem>>, vector<64x2048xf32>,
    return
  }
  func.func @transform_0(%arg0: i32) -> (i32, i32) {
    %c0_i32 = arith.constant 0 : i32
    %c0_i32_0 = arith.constant 0 : i32
    return %arg0, %c0_i32 : i32, i32
  }
  func.func @transform_1(%arg0: i32) -> (i32, i32) {
    %c0_i32 = arith.constant 0 : i32
    %c0_i32_0 = arith.constant 0 : i32
    return %arg0, %c0_i32 : i32, i32
  }
}

</mosaic_0001>

<bundles_post_ra>
// kernel: tpu_custom_call.1
= control target key start
LH: loop header
LB: loop body
LE: loop exit
PB: predicated region body
PF: predicated region fallthrough
CT: control target
= control target key end

     0   :  { %6 = vsyncpa [#allocation3], 0  ;;  %s3129_s0 = inlined_call_operand.hbm [shape: f32[128,2048], index: 0, kind: input, shape index: {}]   ;;  %s3130_s1 = inlined_call_operand.hbm [shape: f32[128,2048], index: 1, kind: output, shape index: {}]  }
   0x1   :  { %8 = vsyncpa [#allocation3 + $0x1], 0 }
   0x2   :  { %9 = vsyncpa [#allocation4], 0 }
   0x3   :  { %11 = vsyncpa [#allocation4 + $0x1], 0  ;;  %s2198_s6 = smov 0   ;;  %s2200_s7 = smov 0  }
   0x4   :  { %s2202_s8 = smov 0   ;;  %s2204_s9 = smov 0  }
   0x5 LB: > { %s2219_s10 = sadd.s32 4294967295, %s2180_s9   ;;  %s1378_s11 = sadd.s32 4294967294, %s2180_s9   ;;  %s2180_s9 = sphi %s2204_s9, %s3145_s9   ;;  %s2176_s8 = sphi %s2202_s8, %s3144_s8   ;;  %s2172_s7 = sphi %s2200_s7, %s3143_s7   ;;  %s2168_s6 = sphi %s2198_s6, %s3142_s6  }
   0x6   : > { %s2223_s12 = sadd.s32 1, %s2180_s9   ;;  %s24_s13 = sadd.s32 1, %s2176_s8 }
   0x7   : > { %s21_s14 = ssub.s32 %s2180_s9, %s2223_s12  ;;  %p31_p0 = scmp.ne.s32.totalorder %s2176_s8, %s2172_s7 }
   0x8   : > { %p22_p1 = scmp.eq.s32.totalorder %s21_s14, 0  ;;  %p32_p2 = scmp.eq.s32.totalorder %s2180_s9, 0 }
   0x9   : > { %p37_p3 = scmp.ne.s32.totalorder %s2172_s7, %s2168_s6  ;;  %p38_p4 = scmp.eq.s32.totalorder %s2219_s10, 0 }
   0xa   : > { %s2235_s15 = scalar_select %p22_p1, %s2176_s8, %s24_s13  }
   0xb   : > { %p2237_p5 = por %p32_p2, %p31_p0  ;;  %p2241_p6 = por %p38_p4, %p37_p3 }
   0xc   : > { %p61_p7 = scmp.eq.s32.totalorder %s2219_s10, 1  ;;  %p67_p8 = scmp.eq.s32.totalorder %s1378_s11, 1 }
   0xd   : > { %s3134_s17 = scalar_select %p2241_p6, 1, 0 }
   0xe   : > { %p1538_p10 = scmp.lt.s32.totalorder %s2180_s9, 2  ;;  %p2248_p11 = por %p61_p7, %p31_p0 }
   0xf   : > { %p2252_p12 = por %p67_p8, %p37_p3  ;;  %s87_s20 = sand.u32 1, %s2176_s8  }
  0x10   : > { %s3135_s18 = scalar_select %p2248_p11, 1, 0 }
  0x11   : > { %s3136_s19 = scalar_select %p2252_p12, 1, 0 }
  0x12   : > { %s1523_s21 = sshll.u32 %s2180_s9, 14  ;;  %s1381_s22 = sshll.u32 %s87_s20, 10 }
  0x13   : > { %s2261_s25 = scalar_lea.hbm %s3129_s0, %s1523_s21  ;;  %s91_s26 = scalar_lea.vmem [#allocation2], %s1381_s22 }
  0x14   : > { %s99_s27 = sshll.u32 %s91_s26, 4  ;;  %p2265_p13 = pnand %p1538_p10, %p2237_p5  ;;  %s2269_s27 = int_to_ptr.vmem [resolvable:$true] %s99_s27 }
  0x15   : > { %s2271_s29 = scalar_lea.sflag [#allocation3], %s87_s20  ;;  %s2088_s30 = scalar_lea.hbm %s2261_s25, 16384 }
  0x16   : > { %p2089_p0 = scmp.ne.s32.totalorder %s2261_s25, %s2088_s30  ;;  %p2090_p1 = pneg %p2265_p13 }
  0x17   : > { %s2093_s4 = scalar_lea.hbm %s3129_s0, 32768  ;;  %p2094_p4 = scmp.lt.s32.totalorder %s2261_s25, %s3129_s0 }
  0x18   : > { %p2091_p2 = pnand %p2090_p1, %p2089_p0  ;;  %p2095_p5 = scmp.lt.s32.totalorder %s2093_s4, %s2088_s30 }
  0x1a   : > { %p2092_p3 = pneg %p2091_p2  ;;  %p2096_p7 = por %p2095_p5, %p2094_p4 }
  0x1c   : > { %p2097_p8 = pnand %p2096_p7, %p2092_p3 }
  0x1e   : > { %2100 = shalt.err (!%p2097_p8)
}
  0x1f   : > { %s2101_s13 = scalar_lea.vmem %s2269_s27, 16384  ;;  %s2182_s14 = smov [#allocation2]  }
  0x20   : > { %p2102_p10 = scmp.ne.s32.totalorder %s2269_s27, %s2101_s13  ;;  %s2106_s16 = sshll.u32 %s2182_s14, 4  ;;  %s2107_s16 = int_to_ptr.vmem [resolvable:$false] %s2106_s16 }
  0x21   : > { %s2108_s20 = scalar_lea.vmem %s2107_s16, 32768  ;;  %p2109_p2 = scmp.lt.s32.totalorder %s2269_s27, %s2107_s16 }
  0x22   : > { %p2104_p9 = pnand %p2102_p10, %p2090_p1  ;;  %p2110_p12 = scmp.lt.s32.totalorder %s2108_s20, %s2101_s13 }
  0x24   : > { %p2105_p0 = pneg %p2104_p9  ;;  %p2111_p11 = por %p2110_p12, %p2109_p2 }
  0x26   : > { %p2112_p6 = pnand %p2111_p11, %p2105_p0 }
  0x28   : > { %2115 = shalt.err (!%p2112_p6)
}
  0x29   : > { %s2183_s21 = smov 2048   ;;  %s2184_s22 = smov 128  }
  0x2a   : > { %1533 = dma.hbm_to_vmem [thread:$0]  (!%p2265_p13), %s2261_s25, 16384, %s2269_s27, %s2271_s29, %s2183_s21, %s2183_s21, %s2184_s22  }
  0x2b   : > { %p1385_p9 = scmp.ge.s32.totalorder %s2180_s9, 1  ;;  %p107_p1 = scmp.lt.s32.totalorder %s2180_s9, 3 }
  0x2d   : > { %p108_p3 = pnand %p1385_p9, %p107_p1 }
  0x2e   : > { %s2295_s23 = sand.u32 (!%p108_p3), 1, %s2172_s7   ;;  %p3138_p6 = scmp.ne.s32.totalorder (!%p108_p3), %s3134_s17, 0 }
  0x2f   : > { %111 = sbr.rel (%p108_p3) target bundleno = 341 (0x155), region = 24  ;;  %s1386_s24 = sshll.u32 (!%p108_p3), %s2295_s23, 10 }
  0x30   : > { %s114_s26 = scalar_lea.sflag (!%p108_p3), [#allocation3], %s2295_s23  ;;  %s2301_s30 = scalar_lea.vmem (!%p108_p3), [#allocation2], %s1386_s24 }
  0x34   : > { %2159 = dma.done.wait (%p3138_p6), %s114_s26, 16384  }
  0x35   : > { %2161 = vsyncadd (%p3138_p6), %s114_s26, 4294950912  ;;  %v2308_v0 = vld [vmem:[%s2301_s30] sm:$0xff]  ;;  %v2311_v1 = vld [vmem:[%s2301_s30 + $0x8] sm:$0xff]  ;;  %s2400_s17 = scalar_lea.vmem [#allocation5], %s1386_s24  ;;  %s1525_s25 = sshll.u32 %s2219_s10, 14 }
  0x36   : > { %v2314_v2 = vld [vmem:[%s2301_s30 + $0x10] sm:$0xff]  ;;  %v1388_v3 = vmul.f32 -1.442695, %v2308_v0  ;;  %v1389_v4 = vmul.f32 -1.442695, %v2311_v1  ;;  %v2320_v6 = vld [vmem:[%s2301_s30 + $0x18] sm:$0xff]  ;;  %s3080_s10 = scalar_lea.hbm %s3130_s1, %s1525_s25 }
  0x37   : > { %v1390_v5 = vmul.f32 -1.442695, %v2314_v2  ;;  %v2323_v7 = vld [vmem:[%s2301_s30 + $0x20] sm:$0xff]  ;;  %v2326_v8 = vld [vmem:[%s2301_s30 + $0x28] sm:$0xff]  ;;  %v1391_v9 = vmul.f32 -1.442695, %v2320_v6 }
  0x38   : > { %1576 = vpow2.f32 %v1388_v3  ;;  %v1392_v10 = vmul.f32 -1.442695, %v2323_v7  ;;  %v1393_v11 = vmul.f32 -1.442695, %v2326_v8  ;;  %v2332_v12 = vld [vmem:[%s2301_s30 + $0x30] sm:$0xff]  ;;  %v2335_v13 = vld [vmem:[%s2301_s30 + $0x38] sm:$0xff] }
  0x39   : > { %1578 = vpow2.f32 %v1389_v4  ;;  %v2338_v14 = vld [vmem:[%s2301_s30 + $0x40] sm:$0xff]  ;;  %v1394_v15 = vmul.f32 -1.442695, %v2332_v12  ;;  %v1395_v16 = vmul.f32 -1.442695, %v2335_v13  ;;  %v2343_v17 = vld [vmem:[%s2301_s30 + $0x48] sm:$0xff] }
  0x3a   : > { %1580 = vpow2.f32 %v1390_v5  ;;  %v2346_v18 = vld [vmem:[%s2301_s30 + $0x50] sm:$0xff]  ;;  %v1396_v19 = vmul.f32 -1.442695, %v2338_v14  ;;  %v2350_v20 = vld [vmem:[%s2301_s30 + $0x58] sm:$0xff]  ;;  %v1397_v21 = vmul.f32 -1.442695, %v2343_v17 }
  0x3b   : > { %1582 = vpow2.f32 %v1391_v9  ;;  %v2354_v22 = vld [vmem:[%s2301_s30 + $0x60] sm:$0xff]  ;;  %v1398_v23 = vmul.f32 -1.442695, %v2346_v18  ;;  %v2358_v24 = vld [vmem:[%s2301_s30 + $0x68] sm:$0xff]  ;;  %v1399_v25 = vmul.f32 -1.442695, %v2350_v20 }
  0x3c   : > { %1584 = vpow2.f32 %v1392_v10  ;;  %v2362_v26 = vld [vmem:[%s2301_s30 + $0x70] sm:$0xff]  ;;  %v1400_v27 = vmul.f32 -1.442695, %v2354_v22  ;;  %v2366_v28 = vld [vmem:[%s2301_s30 + $0x78] sm:$0xff]  ;;  %v1401_v29 = vmul.f32 -1.442695, %v2358_v24 }
  0x3d   : > { %1586 = vpow2.f32 %v1393_v11  ;;  %v1402_v30 = vmul.f32 -1.442695, %v2362_v26  ;;  %v1403_v31 = vmul.f32 -1.442695, %v2366_v28  ;;  %v2372_v57 = vld [vmem:[%s2301_s30 + $0x80] sm:$0xff]  ;;  %v2375_v60 = vld [vmem:[%s2301_s30 + $0x88] sm:$0xff] }
  0x3e   : > { %1588 = vpow2.f32 %v1394_v15  ;;  %v2378_v63 = vld [vmem:[%s2301_s30 + $0x90] sm:$0xff]  ;;  %v1404_v5 = vmul.f32 -1.442695, %v2372_v57  ;;  %v2382_v9 = vld [vmem:[%s2301_s30 + $0x98] sm:$0xff]  ;;  %v1405_v15 = vmul.f32 -1.442695, %v2375_v60 }
  0x3f   : > { %1590 = vpow2.f32 %v1395_v16  ;;  %v2386_v16 = vld [vmem:[%s2301_s30 + $0xa0] sm:$0xff]  ;;  %s1305_s27 = sshll.u32 %s2400_s17, 4  ;;  %s1291_s2 = scalar_lea.sflag [#allocation4], %s2295_s23  ;;  %s3082_s27 = int_to_ptr.vmem [resolvable:$true] %s1305_s27 }
  0x40   : > { %1592 = vpow2.f32 %v1396_v19  ;;  %s2116_s3 = scalar_lea.vmem %s3082_s27, 16384  ;;  %p3139_p12 = scmp.ne.s32.totalorder %s3135_s18, 0 }
  0x41   : > { %1594 = vpow2.f32 %v1397_v21  ;;  %p2117_p11 = scmp.ne.s32.totalorder %s3082_s27, %s2116_s3  ;;  %s2185_s4 = smov [#allocation5]  }
  0x42   : > { %1596 = vpow2.f32 %v1398_v23  ;;  %v1406_v23 = vmul.f32 -1.442695, %v2378_v63  ;;  %s2120_s5 = sshll.u32 %s2185_s4, 4  ;;  %s2121_s5 = int_to_ptr.vmem [resolvable:$false] %s2120_s5 }
  0x43   : > { %1598 = vpow2.f32 %v1399_v25  ;;  %v2391_v25 = vld [vmem:[%s2301_s30 + $0xa8] sm:$0xff]  ;;  %p2118_p13 = pnand %p2117_p11, %p3139_p12  ;;  %s2122_s11 = scalar_lea.vmem %s2121_s5, 32768 }
  0x44   : > { %1600 = vpow2.f32 %v1400_v27  ;;  %p2123_p5 = scmp.lt.s32.totalorder %s3082_s27, %s2121_s5  ;;  %p2124_p7 = scmp.lt.s32.totalorder %s2122_s11, %s2116_s3 }
  0x45   : > { %v1577_v32 = vpop.eup %1576  ;;  %1602 = vpow2.f32 %v1401_v29  ;;  %p2119_p4 = pneg %p2118_p13 }
  0x46   : > { %v1579_v33 = vpop.eup %1578  ;;  %v650_v34 = vadd.f32 1.0, %v1577_v32  ;;  %1604 = vpow2.f32 %v1402_v30  ;;  %v1407_v30 = vmul.f32 -1.442695, %v2382_v9  ;;  %p2125_p8 = por %p2124_p7, %p2123_p5 }
  0x47   : > { %v1581_v35 = vpop.eup %1580  ;;  %v651_v36 = vadd.f32 1.0, %v1579_v33  ;;  %1606 = vpow2.f32 %v1403_v31  ;;  %v2396_v31 = vld [vmem:[%s2301_s30 + $0xb0] sm:$0xff]  ;;  %v2406_v33 = vld [vmem:[%s2301_s30 + $0xb8] sm:$0xff] }
  0x48   : > { %v1583_v37 = vpop.eup %1582  ;;  %1608 = vrcp.f32 %v650_v34  ;;  %v652_v38 = vadd.f32 1.0, %v1581_v35  ;;  %p2126_p10 = pnand %p2125_p8, %p2119_p4 }
  0x49   : > { %v1585_v39 = vpop.eup %1584  ;;  %1610 = vrcp.f32 %v651_v36  ;;  %v653_v40 = vadd.f32 1.0, %v1583_v37  ;;  %v1409_v36 = vmul.f32 -1.442695, %v2391_v25  ;;  %v2412_v37 = vld [vmem:[%s2301_s30 + $0xc0] sm:$0xff] }
  0x4a   : > { %v1587_v41 = vpop.eup %1586  ;;  %1612 = vrcp.f32 %v652_v38  ;;  %v654_v42 = vadd.f32 1.0, %v1585_v39  ;;  %v1410_v39 = vmul.f32 -1.442695, %v2396_v31 }
  0x4b   : > { %v1589_v43 = vpop.eup %1588  ;;  %1614 = vrcp.f32 %v653_v40  ;;  %v655_v44 = vadd.f32 1.0, %v1587_v41  ;;  %v2418_v40 = vld [vmem:[%s2301_s30 + $0xc8] sm:$0xff] }
  0x4c   : > { %v1591_v45 = vpop.eup %1590  ;;  %1616 = vrcp.f32 %v654_v42  ;;  %v656_v46 = vadd.f32 1.0, %v1589_v43  ;;  %v1411_v42 = vmul.f32 -1.442695, %v2406_v33  ;;  %v2424_v43 = vld [vmem:[%s2301_s30 + $0xd0] sm:$0xff] }
  0x4d   : > { %v1593_v47 = vpop.eup %1592  ;;  %1618 = vrcp.f32 %v655_v44  ;;  %v657_v48 = vadd.f32 1.0, %v1591_v45  ;;  %v1412_v45 = vmul.f32 -1.442695, %v2412_v37 }
  0x4e   : > { %v1595_v49 = vpop.eup %1594  ;;  %1620 = vrcp.f32 %v656_v46  ;;  %v658_v50 = vadd.f32 1.0, %v1593_v47  ;;  %v2430_v46 = vld [vmem:[%s2301_s30 + $0xd8] sm:$0xff] }
  0x4f   : > { %v1597_v51 = vpop.eup %1596  ;;  %1622 = vrcp.f32 %v657_v48  ;;  %v659_v52 = vadd.f32 1.0, %v1595_v49  ;;  %v1413_v48 = vmul.f32 -1.442695, %v2418_v40  ;;  %v2436_v49 = vld [vmem:[%s2301_s30 + $0xe0] sm:$0xff] }
  0x50   : > { %v1599_v53 = vpop.eup %1598  ;;  %1624 = vrcp.f32 %v658_v50  ;;  %v660_v54 = vadd.f32 1.0, %v1597_v51  ;;  %v1414_v51 = vmul.f32 -1.442695, %v2424_v43 }
  0x51   : > { %v1601_v55 = vpop.eup %1600  ;;  %1626 = vrcp.f32 %v659_v52  ;;  %v661_v56 = vadd.f32 1.0, %v1599_v53  ;;  %v2442_v52 = vld [vmem:[%s2301_s30 + $0xe8] sm:$0xff] }
  0x52   : > { %v1603_v58 = vpop.eup %1602  ;;  %1628 = vrcp.f32 %v660_v54  ;;  %v662_v59 = vadd.f32 1.0, %v1601_v55  ;;  %v1415_v54 = vmul.f32 -1.442695, %v2430_v46  ;;  %v2448_v55 = vld [vmem:[%s2301_s30 + $0xf0] sm:$0xff] }
  0x53   : > { %v1605_v61 = vpop.eup %1604  ;;  %1630 = vrcp.f32 %v661_v56  ;;  %v663_v62 = vadd.f32 1.0, %v1603_v58  ;;  %v1416_v58 = vmul.f32 -1.442695, %v2436_v49 }
  0x54   : > { %v1607_v3 = vpop.eup %1606  ;;  %1632 = vrcp.f32 %v662_v59  ;;  %v664_v4 = vadd.f32 1.0, %v1605_v61  ;;  %v2454_v59 = vld [vmem:[%s2301_s30 + $0xf8] sm:$0xff] }
  0x55   : > { %v1609_v10 = vpop.eup %1608  ;;  %1634 = vrcp.f32 %v663_v62  ;;  %v665_v11 = vadd.f32 1.0, %v1607_v3  ;;  %v1417_v62 = vmul.f32 -1.442695, %v2442_v52 }
  0x56   : > { %v1611_v19 = vpop.eup %1610  ;;  %v1034_v21 = vmul.f32 %v1609_v10, %v2308_v0  ;;  %1636 = vrcp.f32 %v664_v4 }
  0x57   : > { %v1613_v27 = vpop.eup %1612  ;;  %v1035_v29 = vmul.f32 %v1611_v19, %v2311_v1  ;;  %1638 = vrcp.f32 %v665_v11  ;;  %v1408_v1 = vmul.f32 -1.442695, %v2386_v16 }
  0x58   : > { %v1615_v32 = vpop.eup %1614  ;;  %1162 = vst [vmem:[%s2400_s17] sm:$0xff] %v1034_v21  ;;  %v1036_v0 = vmul.f32 %v1613_v27, %v2314_v2  ;;  %1640 = vpow2.f32 %v1404_v5 }
  0x59   : > { %v1617_v34 = vpop.eup %1616  ;;  %1163 = vst [vmem:[%s2400_s17 + $0x8] sm:$0xff] %v1035_v29  ;;  %v1037_v35 = vmul.f32 %v1615_v32, %v2320_v6  ;;  %1642 = vpow2.f32 %v1405_v15 }
  0x5a   : > { %v1619_v38 = vpop.eup %1618  ;;  %1164 = vst [vmem:[%s2400_s17 + $0x10] sm:$0xff] %v1036_v0  ;;  %v1038_v2 = vmul.f32 %v1617_v34, %v2323_v7  ;;  %1644 = vpow2.f32 %v1406_v23 }
  0x5b   : > { %v1621_v41 = vpop.eup %1620  ;;  %1165 = vst [vmem:[%s2400_s17 + $0x18] sm:$0xff] %v1037_v35  ;;  %v1039_v6 = vmul.f32 %v1619_v38, %v2326_v8  ;;  %1646 = vpow2.f32 %v1407_v30 }
  0x5c   : > { %v1623_v44 = vpop.eup %1622  ;;  %1166 = vst [vmem:[%s2400_s17 + $0x20] sm:$0xff] %v1038_v2  ;;  %v1040_v7 = vmul.f32 %v1621_v41, %v2332_v12  ;;  %1648 = vpow2.f32 %v1408_v1 }
  0x5d   : > { %v1625_v47 = vpop.eup %1624  ;;  %1167 = vst [vmem:[%s2400_s17 + $0x28] sm:$0xff] %v1039_v6  ;;  %v1041_v8 = vmul.f32 %v1623_v44, %v2335_v13  ;;  %1650 = vpow2.f32 %v1409_v36 }
  0x5e   : > { %v1627_v50 = vpop.eup %1626  ;;  %1168 = vst [vmem:[%s2400_s17 + $0x30] sm:$0xff] %v1040_v7  ;;  %v1042_v12 = vmul.f32 %v1625_v47, %v2338_v14  ;;  %1652 = vpow2.f32 %v1410_v39 }
  0x5f   : > { %v1629_v53 = vpop.eup %1628  ;;  %1169 = vst [vmem:[%s2400_s17 + $0x38] sm:$0xff] %v1041_v8  ;;  %v1043_v13 = vmul.f32 %v1627_v50, %v2343_v17  ;;  %1654 = vpow2.f32 %v1411_v42  ;;  %v2472_v8 = vld [vmem:[%s2301_s30 + $0x100] sm:$0xff] }
  0x60   : > { %v1631_v56 = vpop.eup %1630  ;;  %1170 = vst [vmem:[%s2400_s17 + $0x40] sm:$0xff] %v1042_v12  ;;  %v1044_v14 = vmul.f32 %v1629_v53, %v2346_v18  ;;  %1656 = vpow2.f32 %v1412_v45  ;;  %v1418_v18 = vmul.f32 -1.442695, %v2448_v55  ;;  %v2475_v12 = vld [vmem:[%s2301_s30 + $0x108] sm:$0xff] }
  0x61   : > { %v1633_v61 = vpop.eup %1632  ;;  %1171 = vst [vmem:[%s2400_s17 + $0x48] sm:$0xff] %v1043_v13  ;;  %v1045_v17 = vmul.f32 %v1631_v56, %v2350_v20  ;;  %1658 = vpow2.f32 %v1413_v48  ;;  %v1419_v20 = vmul.f32 -1.442695, %v2454_v59  ;;  %v2478_v13 = vld [vmem:[%s2301_s30 + $0x110] sm:$0xff] }
  0x62   : > { %v1635_v3 = vpop.eup %1634  ;;  %1172 = vst [vmem:[%s2400_s17 + $0x50] sm:$0xff] %v1044_v14  ;;  %v1046_v4 = vmul.f32 %v1633_v61, %v2354_v22  ;;  %1660 = vpow2.f32 %v1414_v51  ;;  %v1420_v14 = vmul.f32 -1.442695, %v2472_v8 }
  0x63   : > { %v1637_v5 = vpop.eup %1636  ;;  %1173 = vst [vmem:[%s2400_s17 + $0x58] sm:$0xff] %v1045_v17  ;;  %v1047_v10 = vmul.f32 %v1635_v3, %v2358_v24  ;;  %1662 = vpow2.f32 %v1415_v54  ;;  %v2486_v3 = vld [vmem:[%s2301_s30 + $0x120] sm:$0xff] }
  0x64   : > { %v1639_v11 = vpop.eup %1638  ;;  %1174 = vst [vmem:[%s2400_s17 + $0x60] sm:$0xff] %v1046_v4  ;;  %v1048_v15 = vmul.f32 %v1637_v5, %v2362_v26  ;;  %1664 = vpow2.f32 %v1416_v58  ;;  %v2482_v58 = vld [vmem:[%s2301_s30 + $0x118] sm:$0xff]  ;;  %v1422_v5 = vmul.f32 -1.442695, %v2478_v13 }
  0x65   : > { %v1641_v19 = vpop.eup %1640  ;;  %1175 = vst [vmem:[%s2400_s17 + $0x68] sm:$0xff] %v1047_v10  ;;  %v1049_v22 = vmul.f32 %v1639_v11, %v2366_v28  ;;  %1666 = vpow2.f32 %v1417_v62  ;;  %v1421_v62 = vmul.f32 -1.442695, %v2475_v12  ;;  %v2491_v10 = vld [vmem:[%s2301_s30 + $0x128] sm:$0xff] }
  0x66   : > { %v1643_v21 = vpop.eup %1642  ;;  %1176 = vst [vmem:[%s2400_s17 + $0x70] sm:$0xff] %v1048_v15  ;;  %v666_v23 = vadd.f32 1.0, %v1641_v19  ;;  %1668 = vpow2.f32 %v1418_v18  ;;  %v1423_v15 = vmul.f32 -1.442695, %v2482_v58  ;;  %v2496_v19 = vld [vmem:[%s2301_s30 + $0x130] sm:$0xff] }
  0x67   : > { %v1645_v27 = vpop.eup %1644  ;;  %1177 = vst [vmem:[%s2400_s17 + $0x78] sm:$0xff] %v1049_v22  ;;  %v667_v24 = vadd.f32 1.0, %v1643_v21  ;;  %1670 = vpow2.f32 %v1419_v20  ;;  %v1424_v21 = vmul.f32 -1.442695, %v2486_v3 }
  0x68   : > { %v1647_v29 = vpop.eup %1646  ;;  %1672 = vrcp.f32 %v666_v23  ;;  %v668_v30 = vadd.f32 1.0, %v1645_v27  ;;  %v2502_v23 = vld [vmem:[%s2301_s30 + $0x138] sm:$0xff] }
  0x69   : > { %v1649_v32 = vpop.eup %1648  ;;  %1674 = vrcp.f32 %v667_v24  ;;  %v669_v26 = vadd.f32 1.0, %v1647_v29  ;;  %v1425_v24 = vmul.f32 -1.442695, %v2491_v10  ;;  %v2508_v29 = vld [vmem:[%s2301_s30 + $0x140] sm:$0xff] }
  0x6a   : > { %v1651_v0 = vpop.eup %1650  ;;  %1676 = vrcp.f32 %v668_v30  ;;  %v670_v1 = vadd.f32 1.0, %v1649_v32  ;;  %v1426_v32 = vmul.f32 -1.442695, %v2496_v19 }
  0x6b   : > { %v1653_v34 = vpop.eup %1652  ;;  %1678 = vrcp.f32 %v669_v26  ;;  %v671_v28 = vadd.f32 1.0, %v1651_v0  ;;  %v2514_v26 = vld [vmem:[%s2301_s30 + $0x148] sm:$0xff] }
  0x6c   : > { %v1655_v35 = vpop.eup %1654  ;;  %1680 = vrcp.f32 %v670_v1  ;;  %v672_v36 = vadd.f32 1.0, %v1653_v34  ;;  %v1427_v1 = vmul.f32 -1.442695, %v2502_v23  ;;  %v2520_v34 = vld [vmem:[%s2301_s30 + $0x150] sm:$0xff] }
  0x6d   : > { %v1657_v38 = vpop.eup %1656  ;;  %1682 = vrcp.f32 %v671_v28  ;;  %v673_v2 = vadd.f32 1.0, %v1655_v35  ;;  %v1428_v35 = vmul.f32 -1.442695, %v2508_v29 }
  0x6e   : > { %v1659_v39 = vpop.eup %1658  ;;  %1684 = vrcp.f32 %v672_v36  ;;  %v674_v41 = vadd.f32 1.0, %v1657_v38  ;;  %v2526_v36 = vld [vmem:[%s2301_s30 + $0x158] sm:$0xff] }
  0x6f   : > { %v1661_v6 = vpop.eup %1660  ;;  %1686 = vrcp.f32 %v673_v2  ;;  %v675_v42 = vadd.f32 1.0, %v1659_v39  ;;  %v1429_v2 = vmul.f32 -1.442695, %v2514_v26  ;;  %v2532_v39 = vld [vmem:[%s2301_s30 + $0x160] sm:$0xff] }
  0x70   : > { %v1663_v44 = vpop.eup %1662  ;;  %1688 = vrcp.f32 %v674_v41  ;;  %v676_v7 = vadd.f32 1.0, %v1661_v6  ;;  %v1430_v6 = vmul.f32 -1.442695, %v2520_v34 }
  0x71   : > { %v1665_v45 = vpop.eup %1664  ;;  %1690 = vrcp.f32 %v675_v42  ;;  %v677_v47 = vadd.f32 1.0, %v1663_v44  ;;  %v2538_v42 = vld [vmem:[%s2301_s30 + $0x168] sm:$0xff] }
  0x72   : > { %v1667_v48 = vpop.eup %1666  ;;  %1692 = vrcp.f32 %v676_v7  ;;  %v678_v50 = vadd.f32 1.0, %v1665_v45  ;;  %v1431_v7 = vmul.f32 -1.442695, %v2526_v36  ;;  %v2544_v45 = vld [vmem:[%s2301_s30 + $0x170] sm:$0xff] }
  0x73   : > { %v1669_v51 = vpop.eup %1668  ;;  %1694 = vrcp.f32 %v677_v47  ;;  %v679_v53 = vadd.f32 1.0, %v1667_v48  ;;  %v1432_v48 = vmul.f32 -1.442695, %v2532_v39 }
  0x74   : > { %v1671_v54 = vpop.eup %1670  ;;  %1696 = vrcp.f32 %v678_v50  ;;  %v680_v56 = vadd.f32 1.0, %v1669_v51  ;;  %v2550_v50 = vld [vmem:[%s2301_s30 + $0x178] sm:$0xff] }
  0x75   : > { %v1673_v61 = vpop.eup %1672  ;;  %1698 = vrcp.f32 %v679_v53  ;;  %v681_v17 = vadd.f32 1.0, %v1671_v54  ;;  %v1433_v53 = vmul.f32 -1.442695, %v2538_v42 }
  0x76   : > { %v1675_v4 = vpop.eup %1674  ;;  %v1050_v18 = vmul.f32 %v1673_v61, %v2372_v57  ;;  %1700 = vrcp.f32 %v680_v56 }
  0x77   : > { %v1677_v20 = vpop.eup %1676  ;;  %v1051_v11 = vmul.f32 %v1675_v4, %v2375_v60  ;;  %1702 = vrcp.f32 %v681_v17 }
  0x78   : > { %v1679_v22 = vpop.eup %1678  ;;  %1178 = vst [vmem:[%s2400_s17 + $0x80] sm:$0xff] %v1050_v18  ;;  %v1052_v57 = vmul.f32 %v1677_v20, %v2378_v63  ;;  %1704 = vpow2.f32 %v1420_v14 }
  0x79   : > { %v1681_v27 = vpop.eup %1680  ;;  %1179 = vst [vmem:[%s2400_s17 + $0x88] sm:$0xff] %v1051_v11  ;;  %v1053_v60 = vmul.f32 %v1679_v22, %v2382_v9  ;;  %1706 = vpow2.f32 %v1421_v62 }
  0x7a   : > { %v1683_v30 = vpop.eup %1682  ;;  %1180 = vst [vmem:[%s2400_s17 + $0x90] sm:$0xff] %v1052_v57  ;;  %v1054_v63 = vmul.f32 %v1681_v27, %v2386_v16  ;;  %1708 = vpow2.f32 %v1422_v5 }
  0x7b   : > { %v1685_v0 = vpop.eup %1684  ;;  %1181 = vst [vmem:[%s2400_s17 + $0x98] sm:$0xff] %v1053_v60  ;;  %v1055_v9 = vmul.f32 %v1683_v30, %v2391_v25  ;;  %1710 = vpow2.f32 %v1423_v15 }
  0x7c   : > { %v1687_v28 = vpop.eup %1686  ;;  %1182 = vst [vmem:[%s2400_s17 + $0xa0] sm:$0xff] %v1054_v63  ;;  %v1056_v16 = vmul.f32 %v1685_v0, %v2396_v31  ;;  %1712 = vpow2.f32 %v1424_v21 }
  0x7d   : > { %v1689_v38 = vpop.eup %1688  ;;  %1183 = vst [vmem:[%s2400_s17 + $0xa8] sm:$0xff] %v1055_v9  ;;  %v1057_v25 = vmul.f32 %v1687_v28, %v2406_v33  ;;  %1714 = vpow2.f32 %v1425_v24 }
  0x7e   : > { %v1691_v41 = vpop.eup %1690  ;;  %1184 = vst [vmem:[%s2400_s17 + $0xb0] sm:$0xff] %v1056_v16  ;;  %v1058_v31 = vmul.f32 %v1689_v38, %v2412_v37  ;;  %1716 = vpow2.f32 %v1426_v32 }
  0x7f   : > { %v1693_v44 = vpop.eup %1692  ;;  %1185 = vst [vmem:[%s2400_s17 + $0xb8] sm:$0xff] %v1057_v25  ;;  %v1059_v33 = vmul.f32 %v1691_v41, %v2418_v40  ;;  %1718 = vpow2.f32 %v1427_v1  ;;  %v2568_v25 = vld [vmem:[%s2301_s30 + $0x180] sm:$0xff] }
  0x80   : > { %v1695_v47 = vpop.eup %1694  ;;  %1186 = vst [vmem:[%s2400_s17 + $0xc0] sm:$0xff] %v1058_v31  ;;  %v1060_v37 = vmul.f32 %v1693_v44, %v2424_v43  ;;  %1720 = vpow2.f32 %v1428_v35  ;;  %v1434_v43 = vmul.f32 -1.442695, %v2544_v45  ;;  %v2571_v31 = vld [vmem:[%s2301_s30 + $0x188] sm:$0xff] }
  0x81   : > { %v1697_v51 = vpop.eup %1696  ;;  %1187 = vst [vmem:[%s2400_s17 + $0xc8] sm:$0xff] %v1059_v33  ;;  %v1061_v40 = vmul.f32 %v1695_v47, %v2430_v46  ;;  %1722 = vpow2.f32 %v1429_v2  ;;  %v1435_v46 = vmul.f32 -1.442695, %v2550_v50  ;;  %v2574_v33 = vld [vmem:[%s2301_s30 + $0x190] sm:$0xff] }
  0x82   : > { %v1699_v54 = vpop.eup %1698  ;;  %1188 = vst [vmem:[%s2400_s17 + $0xd0] sm:$0xff] %v1060_v37  ;;  %v1062_v56 = vmul.f32 %v1697_v51, %v2436_v49  ;;  %1724 = vpow2.f32 %v1430_v6  ;;  %v1436_v37 = vmul.f32 -1.442695, %v2568_v25 }
  0x83   : > { %v1701_v14 = vpop.eup %1700  ;;  %1189 = vst [vmem:[%s2400_s17 + $0xd8] sm:$0xff] %v1061_v40  ;;  %v1063_v61 = vmul.f32 %v1699_v54, %v2442_v52  ;;  %1726 = vpow2.f32 %v1431_v7  ;;  %v2582_v54 = vld [vmem:[%s2301_s30 + $0x1a0] sm:$0xff] }
  0x84   : > { %v1703_v17 = vpop.eup %1702  ;;  %1190 = vst [vmem:[%s2400_s17 + $0xe0] sm:$0xff] %v1062_v56  ;;  %v1064_v62 = vmul.f32 %v1701_v14, %v2448_v55  ;;  %1728 = vpow2.f32 %v1432_v48  ;;  %v2578_v48 = vld [vmem:[%s2301_s30 + $0x198] sm:$0xff]  ;;  %v1438_v14 = vmul.f32 -1.442695, %v2574_v33 }
  0x85   : > { %v1705_v4 = vpop.eup %1704  ;;  %1191 = vst [vmem:[%s2400_s17 + $0xe8] sm:$0xff] %v1063_v61  ;;  %v1065_v49 = vmul.f32 %v1703_v17, %v2454_v59  ;;  %1730 = vpow2.f32 %v1433_v53  ;;  %v1437_v53 = vmul.f32 -1.442695, %v2571_v31  ;;  %v2587_v61 = vld [vmem:[%s2301_s30 + $0x1a8] sm:$0xff] }
  0x86   : > { %v1707_v18 = vpop.eup %1706  ;;  %1192 = vst [vmem:[%s2400_s17 + $0xf0] sm:$0xff] %v1064_v62  ;;  %v682_v5 = vadd.f32 1.0, %v1705_v4  ;;  %1732 = vpow2.f32 %v1434_v43  ;;  %v1439_v62 = vmul.f32 -1.442695, %v2578_v48  ;;  %v2592_v4 = vld [vmem:[%s2301_s30 + $0x1b0] sm:$0xff] }
  0x87   : > { %v1709_v20 = vpop.eup %1708  ;;  %1193 = vst [vmem:[%s2400_s17 + $0xf8] sm:$0xff] %v1065_v49  ;;  %v683_v52 = vadd.f32 1.0, %v1707_v18  ;;  %1734 = vpow2.f32 %v1435_v46  ;;  %v1440_v18 = vmul.f32 -1.442695, %v2582_v54 }
  0x88   : > { %v1711_v11 = vpop.eup %1710  ;;  %1736 = vrcp.f32 %v682_v5  ;;  %v684_v15 = vadd.f32 1.0, %v1709_v20  ;;  %v2598_v5 = vld [vmem:[%s2301_s30 + $0x1b8] sm:$0xff] }
  0x89   : > { %v1713_v22 = vpop.eup %1712  ;;  %1738 = vrcp.f32 %v683_v52  ;;  %v685_v55 = vadd.f32 1.0, %v1711_v11  ;;  %v1441_v52 = vmul.f32 -1.442695, %v2587_v61  ;;  %v2604_v11 = vld [vmem:[%s2301_s30 + $0x1c0] sm:$0xff] }
  0x8a   : > { %v1715_v57 = vpop.eup %1714  ;;  %1740 = vrcp.f32 %v684_v15  ;;  %v686_v21 = vadd.f32 1.0, %v1713_v22  ;;  %v1442_v22 = vmul.f32 -1.442695, %v2592_v4 }
  0x8b   : > { %v1717_v27 = vpop.eup %1716  ;;  %1742 = vrcp.f32 %v685_v55  ;;  %v687_v59 = vadd.f32 1.0, %v1715_v57  ;;  %v2610_v55 = vld [vmem:[%s2301_s30 + $0x1c8] sm:$0xff] }
  0x8c   : > { %v1719_v60 = vpop.eup %1718  ;;  %1744 = vrcp.f32 %v686_v21  ;;  %v688_v24 = vadd.f32 1.0, %v1717_v27  ;;  %v1443_v21 = vmul.f32 -1.442695, %v2598_v5  ;;  %v2616_v27 = vld [vmem:[%s2301_s30 + $0x1d0] sm:$0xff] }
  0x8d   : > { %v1721_v30 = vpop.eup %1720  ;;  %1746 = vrcp.f32 %v687_v59  ;;  %v689_v63 = vadd.f32 1.0, %v1719_v60  ;;  %v1444_v60 = vmul.f32 -1.442695, %v2604_v11 }
  0x8e   : > { %v1723_v32 = vpop.eup %1722  ;;  %1748 = vrcp.f32 %v688_v24  ;;  %v690_v0 = vadd.f32 1.0, %v1721_v30  ;;  %v2622_v24 = vld [vmem:[%s2301_s30 + $0x1d8] sm:$0xff] }
  0x8f   : > { %v1725_v9 = vpop.eup %1724  ;;  %1750 = vrcp.f32 %v689_v63  ;;  %v691_v1 = vadd.f32 1.0, %v1723_v32  ;;  %v1445_v63 = vmul.f32 -1.442695, %v2610_v55  ;;  %v2628_v32 = vld [vmem:[%s2301_s30 + $0x1e0] sm:$0xff] }
  0x90   : > { %v1727_v28 = vpop.eup %1726  ;;  %1752 = vrcp.f32 %v690_v0  ;;  %v692_v16 = vadd.f32 1.0, %v1725_v9  ;;  %v1446_v9 = vmul.f32 -1.442695, %v2616_v27 }
  0x91   : > { %v1729_v35 = vpop.eup %1728  ;;  %1754 = vrcp.f32 %v691_v1  ;;  %v693_v38 = vadd.f32 1.0, %v1727_v28  ;;  %v2634_v1 = vld [vmem:[%s2301_s30 + $0x1e8] sm:$0xff] }
  0x92   : > { %v1731_v2 = vpop.eup %1730  ;;  %1756 = vrcp.f32 %v692_v16  ;;  %v694_v41 = vadd.f32 1.0, %v1729_v35  ;;  %v1447_v16 = vmul.f32 -1.442695, %v2622_v24  ;;  %v2640_v35 = vld [vmem:[%s2301_s30 + $0x1f0] sm:$0xff] }
  0x93   : > { %v1733_v6 = vpop.eup %1732  ;;  %1758 = vrcp.f32 %v693_v38  ;;  %v695_v44 = vadd.f32 1.0, %v1731_v2  ;;  %v1448_v2 = vmul.f32 -1.442695, %v2628_v32 }
  0x94   : > { %v1735_v7 = vpop.eup %1734  ;;  %1760 = vrcp.f32 %v694_v41  ;;  %v696_v47 = vadd.f32 1.0, %v1733_v6  ;;  %v2646_v41 = vld [vmem:[%s2301_s30 + $0x1f8] sm:$0xff] }
  0x95   : > { %v1737_v51 = vpop.eup %1736  ;;  %1762 = vrcp.f32 %v695_v44  ;;  %v697_v40 = vadd.f32 1.0, %v1735_v7  ;;  %v1449_v44 = vmul.f32 -1.442695, %v2634_v1 }
  0x96   : > { %v1739_v56 = vpop.eup %1738  ;;  %v1066_v43 = vmul.f32 %v1737_v51, %v2472_v8  ;;  %1764 = vrcp.f32 %v696_v47 }
  0x97   : > { %v1741_v46 = vpop.eup %1740  ;;  %v1067_v17 = vmul.f32 %v1739_v56, %v2475_v12  ;;  %1766 = vrcp.f32 %v697_v40 }
  0x98   : > { %v1743_v49 = vpop.eup %1742  ;;  %1194 = vst [vmem:[%s2400_s17 + $0x100] sm:$0xff] %v1066_v43  ;;  %v1068_v8 = vmul.f32 %v1741_v46, %v2478_v13  ;;  %1768 = vpow2.f32 %v1436_v37 }
  0x99   : > { %v1745_v20 = vpop.eup %1744  ;;  %1195 = vst [vmem:[%s2400_s17 + $0x108] sm:$0xff] %v1067_v17  ;;  %v1069_v12 = vmul.f32 %v1743_v49, %v2482_v58  ;;  %1770 = vpow2.f32 %v1437_v53 }
  0x9a   : > { %v1747_v15 = vpop.eup %1746  ;;  %1196 = vst [vmem:[%s2400_s17 + $0x110] sm:$0xff] %v1068_v8  ;;  %v1070_v13 = vmul.f32 %v1745_v20, %v2486_v3  ;;  %1772 = vpow2.f32 %v1438_v14 }
  0x9b   : > { %v1749_v57 = vpop.eup %1748  ;;  %1197 = vst [vmem:[%s2400_s17 + $0x118] sm:$0xff] %v1069_v12  ;;  %v1071_v58 = vmul.f32 %v1747_v15, %v2491_v10  ;;  %1774 = vpow2.f32 %v1439_v62 }
  0x9c   : > { %v1751_v59 = vpop.eup %1750  ;;  %1198 = vst [vmem:[%s2400_s17 + $0x120] sm:$0xff] %v1070_v13  ;;  %v1072_v3 = vmul.f32 %v1749_v57, %v2496_v19  ;;  %1776 = vpow2.f32 %v1440_v18 }
  0x9d   : > { %v1753_v30 = vpop.eup %1752  ;;  %1199 = vst [vmem:[%s2400_s17 + $0x128] sm:$0xff] %v1071_v58  ;;  %v1073_v10 = vmul.f32 %v1751_v59, %v2502_v23  ;;  %1778 = vpow2.f32 %v1441_v52 }
  0x9e   : > { %v1755_v0 = vpop.eup %1754  ;;  %1200 = vst [vmem:[%s2400_s17 + $0x130] sm:$0xff] %v1072_v3  ;;  %v1074_v19 = vmul.f32 %v1753_v30, %v2508_v29  ;;  %1780 = vpow2.f32 %v1442_v22 }
  0x9f   : > { %v1757_v28 = vpop.eup %1756  ;;  %1201 = vst [vmem:[%s2400_s17 + $0x138] sm:$0xff] %v1073_v10  ;;  %v1075_v23 = vmul.f32 %v1755_v0, %v2514_v26  ;;  %1782 = vpow2.f32 %v1443_v21  ;;  %v2664_v10 = vld [vmem:[%s2301_s30 + $0x200] sm:$0xff] }
  0xa0   : > { %v1759_v38 = vpop.eup %1758  ;;  %1202 = vst [vmem:[%s2400_s17 + $0x140] sm:$0xff] %v1074_v19  ;;  %v1076_v29 = vmul.f32 %v1757_v28, %v2520_v34  ;;  %1784 = vpow2.f32 %v1444_v60  ;;  %v1450_v34 = vmul.f32 -1.442695, %v2640_v35  ;;  %v2667_v19 = vld [vmem:[%s2301_s30 + $0x208] sm:$0xff] }
  0xa1   : > { %v1761_v6 = vpop.eup %1760  ;;  %1203 = vst [vmem:[%s2400_s17 + $0x148] sm:$0xff] %v1075_v23  ;;  %v1077_v26 = vmul.f32 %v1759_v38, %v2526_v36  ;;  %1786 = vpow2.f32 %v1445_v63  ;;  %v1451_v36 = vmul.f32 -1.442695, %v2646_v41  ;;  %v2670_v23 = vld [vmem:[%s2301_s30 + $0x210] sm:$0xff] }
  0xa2   : > { %v1763_v7 = vpop.eup %1762  ;;  %1204 = vst [vmem:[%s2400_s17 + $0x150] sm:$0xff] %v1076_v29  ;;  %v1078_v47 = vmul.f32 %v1761_v6, %v2532_v39  ;;  %1788 = vpow2.f32 %v1446_v9  ;;  %v1452_v29 = vmul.f32 -1.442695, %v2664_v10 }
  0xa3   : > { %v1765_v37 = vpop.eup %1764  ;;  %1205 = vst [vmem:[%s2400_s17 + $0x158] sm:$0xff] %v1077_v26  ;;  %v1079_v51 = vmul.f32 %v1763_v7, %v2538_v42  ;;  %1790 = vpow2.f32 %v1447_v16  ;;  %v2678_v7 = vld [vmem:[%s2301_s30 + $0x220] sm:$0xff] }
  0xa4   : > { %v1767_v40 = vpop.eup %1766  ;;  %1206 = vst [vmem:[%s2400_s17 + $0x160] sm:$0xff] %v1078_v47  ;;  %v1080_v53 = vmul.f32 %v1765_v37, %v2544_v45  ;;  %1792 = vpow2.f32 %v1448_v2  ;;  %v2674_v2 = vld [vmem:[%s2301_s30 + $0x218] sm:$0xff]  ;;  %v1454_v37 = vmul.f32 -1.442695, %v2670_v23 }
  0xa5   : > { %v1769_v56 = vpop.eup %1768  ;;  %1207 = vst [vmem:[%s2400_s17 + $0x168] sm:$0xff] %v1079_v51  ;;  %v1081_v39 = vmul.f32 %v1767_v40, %v2550_v50  ;;  %1794 = vpow2.f32 %v1449_v44  ;;  %v1453_v44 = vmul.f32 -1.442695, %v2667_v19  ;;  %v2683_v51 = vld [vmem:[%s2301_s30 + $0x228] sm:$0xff] }
  0xa6   : > { %v1771_v43 = vpop.eup %1770  ;;  %1208 = vst [vmem:[%s2400_s17 + $0x170] sm:$0xff] %v1080_v53  ;;  %v698_v14 = vadd.f32 1.0, %v1769_v56  ;;  %1796 = vpow2.f32 %v1450_v34  ;;  %v1455_v53 = vmul.f32 -1.442695, %v2674_v2  ;;  %v2688_v56 = vld [vmem:[%s2301_s30 + $0x230] sm:$0xff] }
  0xa7   : > { %v1773_v46 = vpop.eup %1772  ;;  %1209 = vst [vmem:[%s2400_s17 + $0x178] sm:$0xff] %v1081_v39  ;;  %v699_v42 = vadd.f32 1.0, %v1771_v43  ;;  %1798 = vpow2.f32 %v1451_v36  ;;  %v1456_v43 = vmul.f32 -1.442695, %v2678_v7 }
  0xa8   : > { %v1775_v17 = vpop.eup %1774  ;;  %1800 = vrcp.f32 %v698_v14  ;;  %v700_v62 = vadd.f32 1.0, %v1773_v46  ;;  %v2694_v14 = vld [vmem:[%s2301_s30 + $0x238] sm:$0xff] }
  0xa9   : > { %v1777_v49 = vpop.eup %1776  ;;  %1802 = vrcp.f32 %v699_v42  ;;  %v701_v45 = vadd.f32 1.0, %v1775_v17  ;;  %v1457_v42 = vmul.f32 -1.442695, %v2683_v51  ;;  %v2700_v17 = vld [vmem:[%s2301_s30 + $0x240] sm:$0xff] }
  0xaa   : > { %v1779_v8 = vpop.eup %1778  ;;  %1804 = vrcp.f32 %v700_v62  ;;  %v702_v18 = vadd.f32 1.0, %v1777_v49  ;;  %v1458_v49 = vmul.f32 -1.442695, %v2688_v56 }
  0xab   : > { %v1781_v20 = vpop.eup %1780  ;;  %1806 = vrcp.f32 %v701_v45  ;;  %v703_v50 = vadd.f32 1.0, %v1779_v8  ;;  %v2706_v45 = vld [vmem:[%s2301_s30 + $0x248] sm:$0xff] }
  0xac   : > { %v1783_v12 = vpop.eup %1782  ;;  %1808 = vrcp.f32 %v702_v18  ;;  %v704_v52 = vadd.f32 1.0, %v1781_v20  ;;  %v1459_v18 = vmul.f32 -1.442695, %v2694_v14  ;;  %v2712_v20 = vld [vmem:[%s2301_s30 + $0x250] sm:$0xff] }
  0xad   : > { %v1785_v15 = vpop.eup %1784  ;;  %1810 = vrcp.f32 %v703_v50  ;;  %v705_v13 = vadd.f32 1.0, %v1783_v12  ;;  %v1460_v12 = vmul.f32 -1.442695, %v2700_v17 }
  0xae   : > { %v1787_v22 = vpop.eup %1786  ;;  %1812 = vrcp.f32 %v704_v52  ;;  %v706_v57 = vadd.f32 1.0, %v1785_v15  ;;  %v2718_v52 = vld [vmem:[%s2301_s30 + $0x258] sm:$0xff] }
  0xaf   : > { %v1789_v58 = vpop.eup %1788  ;;  %1814 = vrcp.f32 %v705_v13  ;;  %v707_v21 = vadd.f32 1.0, %v1787_v22  ;;  %v1461_v13 = vmul.f32 -1.442695, %v2706_v45  ;;  %v2724_v22 = vld [vmem:[%s2301_s30 + $0x260] sm:$0xff] }
  0xb0   : > { %v1791_v59 = vpop.eup %1790  ;;  %1816 = vrcp.f32 %v706_v57  ;;  %v708_v3 = vadd.f32 1.0, %v1789_v58  ;;  %v1462_v58 = vmul.f32 -1.442695, %v2712_v20 }
  0xb1   : > { %v1793_v60 = vpop.eup %1792  ;;  %1818 = vrcp.f32 %v707_v21  ;;  %v709_v30 = vadd.f32 1.0, %v1791_v59  ;;  %v2730_v21 = vld [vmem:[%s2301_s30 + $0x268] sm:$0xff] }
  0xb2   : > { %v1795_v63 = vpop.eup %1794  ;;  %1820 = vrcp.f32 %v708_v3  ;;  %v710_v0 = vadd.f32 1.0, %v1793_v60  ;;  %v1463_v3 = vmul.f32 -1.442695, %v2718_v52  ;;  %v2736_v60 = vld [vmem:[%s2301_s30 + $0x270] sm:$0xff] }
  0xb3   : > { %v1797_v9 = vpop.eup %1796  ;;  %1822 = vrcp.f32 %v709_v30  ;;  %v711_v28 = vadd.f32 1.0, %v1795_v63  ;;  %v1464_v63 = vmul.f32 -1.442695, %v2724_v22 }
  0xb4   : > { %v1799_v16 = vpop.eup %1798  ;;  %1824 = vrcp.f32 %v710_v0  ;;  %v712_v38 = vadd.f32 1.0, %v1797_v9  ;;  %v2742_v0 = vld [vmem:[%s2301_s30 + $0x278] sm:$0xff] }
  0xb5   : > { %v1801_v6 = vpop.eup %1800  ;;  %1826 = vrcp.f32 %v711_v28  ;;  %v713_v26 = vadd.f32 1.0, %v1799_v16  ;;  %v1465_v28 = vmul.f32 -1.442695, %v2730_v21 }
  0xb6   : > { %v1803_v47 = vpop.eup %1802  ;;  %v1082_v34 = vmul.f32 %v1801_v6, %v2568_v25  ;;  %1828 = vrcp.f32 %v712_v38 }
  0xb7   : > { %v1805_v36 = vpop.eup %1804  ;;  %v1083_v40 = vmul.f32 %v1803_v47, %v2571_v31  ;;  %1830 = vrcp.f32 %v713_v26 }
  0xb8   : > { %v1807_v39 = vpop.eup %1806  ;;  %1210 = vst [vmem:[%s2400_s17 + $0x180] sm:$0xff] %v1082_v34  ;;  %v1084_v25 = vmul.f32 %v1805_v36, %v2574_v33  ;;  %1832 = vpow2.f32 %v1452_v29 }
  0xb9   : > { %v1809_v46 = vpop.eup %1808  ;;  %1211 = vst [vmem:[%s2400_s17 + $0x188] sm:$0xff] %v1083_v40  ;;  %v1085_v31 = vmul.f32 %v1807_v39, %v2578_v48  ;;  %1834 = vpow2.f32 %v1453_v44 }
  0xba   : > { %v1811_v62 = vpop.eup %1810  ;;  %1212 = vst [vmem:[%s2400_s17 + $0x190] sm:$0xff] %v1084_v25  ;;  %v1086_v33 = vmul.f32 %v1809_v46, %v2582_v54  ;;  %1836 = vpow2.f32 %v1454_v37 }
  0xbb   : > { %v1813_v8 = vpop.eup %1812  ;;  %1213 = vst [vmem:[%s2400_s17 + $0x198] sm:$0xff] %v1085_v31  ;;  %v1087_v48 = vmul.f32 %v1811_v62, %v2587_v61  ;;  %1838 = vpow2.f32 %v1455_v53 }
  0xbc   : > { %v1815_v50 = vpop.eup %1814  ;;  %1214 = vst [vmem:[%s2400_s17 + $0x1a0] sm:$0xff] %v1086_v33  ;;  %v1088_v54 = vmul.f32 %v1813_v8, %v2592_v4  ;;  %1840 = vpow2.f32 %v1456_v43 }
  0xbd   : > { %v1817_v15 = vpop.eup %1816  ;;  %1215 = vst [vmem:[%s2400_s17 + $0x1a8] sm:$0xff] %v1087_v48  ;;  %v1089_v61 = vmul.f32 %v1815_v50, %v2598_v5  ;;  %1842 = vpow2.f32 %v1457_v42 }
  0xbe   : > { %v1819_v57 = vpop.eup %1818  ;;  %1216 = vst [vmem:[%s2400_s17 + $0x1b0] sm:$0xff] %v1088_v54  ;;  %v1090_v4 = vmul.f32 %v1817_v15, %v2604_v11  ;;  %1844 = vpow2.f32 %v1458_v49 }
  0xbf   : > { %v1821_v59 = vpop.eup %1820  ;;  %1217 = vst [vmem:[%s2400_s17 + $0x1b8] sm:$0xff] %v1089_v61  ;;  %v1091_v5 = vmul.f32 %v1819_v57, %v2610_v55  ;;  %1846 = vpow2.f32 %v1459_v18  ;;  %v2760_v61 = vld [vmem:[%s2301_s30 + $0x280] sm:$0xff] }
  0xc0   : > { %v1823_v30 = vpop.eup %1822  ;;  %1218 = vst [vmem:[%s2400_s17 + $0x1c0] sm:$0xff] %v1090_v4  ;;  %v1092_v11 = vmul.f32 %v1821_v59, %v2616_v27  ;;  %1848 = vpow2.f32 %v1460_v12  ;;  %v1466_v27 = vmul.f32 -1.442695, %v2736_v60  ;;  %v2763_v4 = vld [vmem:[%s2301_s30 + $0x288] sm:$0xff] }
  0xc1   : > { %v1825_v9 = vpop.eup %1824  ;;  %1219 = vst [vmem:[%s2400_s17 + $0x1c8] sm:$0xff] %v1091_v5  ;;  %v1093_v55 = vmul.f32 %v1823_v30, %v2622_v24  ;;  %1850 = vpow2.f32 %v1461_v13  ;;  %v1467_v24 = vmul.f32 -1.442695, %v2742_v0  ;;  %v2766_v5 = vld [vmem:[%s2301_s30 + $0x290] sm:$0xff] }
  0xc2   : > { %v1827_v16 = vpop.eup %1826  ;;  %1220 = vst [vmem:[%s2400_s17 + $0x1d0] sm:$0xff] %v1092_v11  ;;  %v1094_v38 = vmul.f32 %v1825_v9, %v2628_v32  ;;  %1852 = vpow2.f32 %v1462_v58  ;;  %v1468_v11 = vmul.f32 -1.442695, %v2760_v61 }
  0xc3   : > { %v1829_v29 = vpop.eup %1828  ;;  %1221 = vst [vmem:[%s2400_s17 + $0x1d8] sm:$0xff] %v1093_v55  ;;  %v1095_v6 = vmul.f32 %v1827_v16, %v2634_v1  ;;  %1854 = vpow2.f32 %v1463_v3  ;;  %v2774_v16 = vld [vmem:[%s2301_s30 + $0x2a0] sm:$0xff] }
  0xc4   : > { %v1831_v26 = vpop.eup %1830  ;;  %1222 = vst [vmem:[%s2400_s17 + $0x1e0] sm:$0xff] %v1094_v38  ;;  %v1096_v44 = vmul.f32 %v1829_v29, %v2640_v35  ;;  %1856 = vpow2.f32 %v1464_v63  ;;  %v2770_v63 = vld [vmem:[%s2301_s30 + $0x298] sm:$0xff]  ;;  %v1470_v29 = vmul.f32 -1.442695, %v2766_v5 }
  0xc5   : > { %v1833_v47 = vpop.eup %1832  ;;  %1223 = vst [vmem:[%s2400_s17 + $0x1e8] sm:$0xff] %v1095_v6  ;;  %v1097_v32 = vmul.f32 %v1831_v26, %v2646_v41  ;;  %1858 = vpow2.f32 %v1465_v28  ;;  %v1469_v28 = vmul.f32 -1.442695, %v2763_v4  ;;  %v2779_v6 = vld [vmem:[%s2301_s30 + $0x2a8] sm:$0xff] }
  0xc6   : > { %v1835_v34 = vpop.eup %1834  ;;  %1224 = vst [vmem:[%s2400_s17 + $0x1f0] sm:$0xff] %v1096_v44  ;;  %v714_v37 = vadd.f32 1.0, %v1833_v47  ;;  %1860 = vpow2.f32 %v1466_v27  ;;  %v1471_v44 = vmul.f32 -1.442695, %v2770_v63  ;;  %v2784_v47 = vld [vmem:[%s2301_s30 + $0x2b0] sm:$0xff] }
  0xc7   : > { %v1837_v36 = vpop.eup %1836  ;;  %1225 = vst [vmem:[%s2400_s17 + $0x1f8] sm:$0xff] %v1097_v32  ;;  %v715_v1 = vadd.f32 1.0, %v1835_v34  ;;  %1862 = vpow2.f32 %v1467_v24  ;;  %v1472_v34 = vmul.f32 -1.442695, %v2774_v16 }
  0xc8   : > { %v1839_v40 = vpop.eup %1838  ;;  %1864 = vrcp.f32 %v714_v37  ;;  %v716_v53 = vadd.f32 1.0, %v1837_v36  ;;  %v2790_v37 = vld [vmem:[%s2301_s30 + $0x2b8] sm:$0xff] }
  0xc9   : > { %v1841_v39 = vpop.eup %1840  ;;  %1866 = vrcp.f32 %v715_v1  ;;  %v717_v35 = vadd.f32 1.0, %v1839_v40  ;;  %v1473_v1 = vmul.f32 -1.442695, %v2779_v6  ;;  %v2796_v40 = vld [vmem:[%s2301_s30 + $0x2c0] sm:$0xff] }
  0xca   : > { %v1843_v25 = vpop.eup %1842  ;;  %1868 = vrcp.f32 %v716_v53  ;;  %v718_v43 = vadd.f32 1.0, %v1841_v39  ;;  %v1474_v39 = vmul.f32 -1.442695, %v2784_v47 }
  0xcb   : > { %v1845_v46 = vpop.eup %1844  ;;  %1870 = vrcp.f32 %v717_v35  ;;  %v719_v41 = vadd.f32 1.0, %v1843_v25  ;;  %v2802_v35 = vld [vmem:[%s2301_s30 + $0x2c8] sm:$0xff] }
  0xcc   : > { %v1847_v31 = vpop.eup %1846  ;;  %1872 = vrcp.f32 %v718_v43  ;;  %v720_v42 = vadd.f32 1.0, %v1845_v46  ;;  %v1475_v43 = vmul.f32 -1.442695, %v2790_v37  ;;  %v2808_v46 = vld [vmem:[%s2301_s30 + $0x2d0] sm:$0xff] }
  0xcd   : > { %v1849_v62 = vpop.eup %1848  ;;  %1874 = vrcp.f32 %v719_v41  ;;  %v721_v33 = vadd.f32 1.0, %v1847_v31  ;;  %v1476_v31 = vmul.f32 -1.442695, %v2796_v40 }
  0xce   : > { %v1851_v49 = vpop.eup %1850  ;;  %1876 = vrcp.f32 %v720_v42  ;;  %v722_v8 = vadd.f32 1.0, %v1849_v62  ;;  %v2814_v42 = vld [vmem:[%s2301_s30 + $0x2d8] sm:$0xff] }
  0xcf   : > { %v1853_v48 = vpop.eup %1852  ;;  %1878 = vrcp.f32 %v721_v33  ;;  %v723_v18 = vadd.f32 1.0, %v1851_v49  ;;  %v1477_v33 = vmul.f32 -1.442695, %v2802_v35  ;;  %v2820_v49 = vld [vmem:[%s2301_s30 + $0x2e0] sm:$0xff] }
  0xd0   : > { %v1855_v50 = vpop.eup %1854  ;;  %1880 = vrcp.f32 %v722_v8  ;;  %v724_v54 = vadd.f32 1.0, %v1853_v48  ;;  %v1478_v48 = vmul.f32 -1.442695, %v2808_v46 }
  0xd1   : > { %v1857_v12 = vpop.eup %1856  ;;  %1882 = vrcp.f32 %v723_v18  ;;  %v725_v15 = vadd.f32 1.0, %v1855_v50  ;;  %v2826_v18 = vld [vmem:[%s2301_s30 + $0x2e8] sm:$0xff] }
  0xd2   : > { %v1859_v13 = vpop.eup %1858  ;;  %1884 = vrcp.f32 %v724_v54  ;;  %v726_v57 = vadd.f32 1.0, %v1857_v12  ;;  %v1479_v54 = vmul.f32 -1.442695, %v2814_v42  ;;  %v2832_v12 = vld [vmem:[%s2301_s30 + $0x2f0] sm:$0xff] }
  0xd3   : > { %v1861_v58 = vpop.eup %1860  ;;  %1886 = vrcp.f32 %v725_v15  ;;  %v727_v59 = vadd.f32 1.0, %v1859_v13  ;;  %v1480_v13 = vmul.f32 -1.442695, %v2820_v49 }
  0xd4   : > { %v1863_v3 = vpop.eup %1862  ;;  %1888 = vrcp.f32 %v726_v57  ;;  %v728_v30 = vadd.f32 1.0, %v1861_v58  ;;  %v2838_v57 = vld [vmem:[%s2301_s30 + $0x2f8] sm:$0xff] }
  0xd5   : > { %v1865_v9 = vpop.eup %1864  ;;  %1890 = vrcp.f32 %v727_v59  ;;  %v729_v55 = vadd.f32 1.0, %v1863_v3  ;;  %v1481_v59 = vmul.f32 -1.442695, %v2826_v18 }
  0xd6   : > { %v1867_v38 = vpop.eup %1866  ;;  %v1098_v27 = vmul.f32 %v1865_v9, %v2664_v10  ;;  %1892 = vrcp.f32 %v728_v30 }
  0xd7   : > { %v1869_v24 = vpop.eup %1868  ;;  %v1099_v26 = vmul.f32 %v1867_v38, %v2667_v19  ;;  %1894 = vrcp.f32 %v729_v55 }
  0xd8   : > { %v1871_v32 = vpop.eup %1870  ;;  %1226 = vst [vmem:[%s2400_s17 + $0x200] sm:$0xff] %v1098_v27  ;;  %v1100_v10 = vmul.f32 %v1869_v24, %v2670_v23  ;;  %1896 = vpow2.f32 %v1468_v11 }
  0xd9   : > { %v1873_v36 = vpop.eup %1872  ;;  %1227 = vst [vmem:[%s2400_s17 + $0x208] sm:$0xff] %v1099_v26  ;;  %v1101_v19 = vmul.f32 %v1871_v32, %v2674_v2  ;;  %1898 = vpow2.f32 %v1469_v28 }
  0xda   : > { %v1875_v53 = vpop.eup %1874  ;;  %1228 = vst [vmem:[%s2400_s17 + $0x210] sm:$0xff] %v1100_v10  ;;  %v1102_v23 = vmul.f32 %v1873_v36, %v2678_v7  ;;  %1900 = vpow2.f32 %v1470_v29 }
  0xdb   : > { %v1877_v25 = vpop.eup %1876  ;;  %1229 = vst [vmem:[%s2400_s17 + $0x218] sm:$0xff] %v1101_v19  ;;  %v1103_v2 = vmul.f32 %v1875_v53, %v2683_v51  ;;  %1902 = vpow2.f32 %v1471_v44 }
  0xdc   : > { %v1879_v41 = vpop.eup %1878  ;;  %1230 = vst [vmem:[%s2400_s17 + $0x220] sm:$0xff] %v1102_v23  ;;  %v1104_v7 = vmul.f32 %v1877_v25, %v2688_v56  ;;  %1904 = vpow2.f32 %v1472_v34 }
  0xdd   : > { %v1881_v62 = vpop.eup %1880  ;;  %1231 = vst [vmem:[%s2400_s17 + $0x228] sm:$0xff] %v1103_v2  ;;  %v1105_v51 = vmul.f32 %v1879_v41, %v2694_v14  ;;  %1906 = vpow2.f32 %v1473_v1 }
  0xde   : > { %v1883_v8 = vpop.eup %1882  ;;  %1232 = vst [vmem:[%s2400_s17 + $0x230] sm:$0xff] %v1104_v7  ;;  %v1106_v56 = vmul.f32 %v1881_v62, %v2700_v17  ;;  %1908 = vpow2.f32 %v1474_v39 }
  0xdf   : > { %v1885_v50 = vpop.eup %1884  ;;  %1233 = vst [vmem:[%s2400_s17 + $0x238] sm:$0xff] %v1105_v51  ;;  %v1107_v14 = vmul.f32 %v1883_v8, %v2706_v45  ;;  %1910 = vpow2.f32 %v1475_v43  ;;  %v2856_v51 = vld [vmem:[%s2301_s30 + $0x300] sm:$0xff] }
  0xe0   : > { %v1887_v15 = vpop.eup %1886  ;;  %1234 = vst [vmem:[%s2400_s17 + $0x240] sm:$0xff] %v1106_v56  ;;  %v1108_v17 = vmul.f32 %v1885_v50, %v2712_v20  ;;  %1912 = vpow2.f32 %v1476_v31  ;;  %v1482_v20 = vmul.f32 -1.442695, %v2832_v12  ;;  %v2859_v56 = vld [vmem:[%s2301_s30 + $0x308] sm:$0xff] }
  0xe1   : > { %v1889_v58 = vpop.eup %1888  ;;  %1235 = vst [vmem:[%s2400_s17 + $0x248] sm:$0xff] %v1107_v14  ;;  %v1109_v45 = vmul.f32 %v1887_v15, %v2718_v52  ;;  %1914 = vpow2.f32 %v1477_v33  ;;  %v1483_v52 = vmul.f32 -1.442695, %v2838_v57  ;;  %v2862_v14 = vld [vmem:[%s2301_s30 + $0x310] sm:$0xff] }
  0xe2   : > { %v1891_v3 = vpop.eup %1890  ;;  %1236 = vst [vmem:[%s2400_s17 + $0x250] sm:$0xff] %v1108_v17  ;;  %v1110_v30 = vmul.f32 %v1889_v58, %v2724_v22  ;;  %1916 = vpow2.f32 %v1478_v48  ;;  %v1484_v17 = vmul.f32 -1.442695, %v2856_v51 }
  0xe3   : > { %v1893_v11 = vpop.eup %1892  ;;  %1237 = vst [vmem:[%s2400_s17 + $0x258] sm:$0xff] %v1109_v45  ;;  %v1111_v9 = vmul.f32 %v1891_v3, %v2730_v21  ;;  %1918 = vpow2.f32 %v1479_v54  ;;  %v2870_v3 = vld [vmem:[%s2301_s30 + $0x320] sm:$0xff] }
  0xe4   : > { %v1895_v55 = vpop.eup %1894  ;;  %1238 = vst [vmem:[%s2400_s17 + $0x260] sm:$0xff] %v1110_v30  ;;  %v1112_v28 = vmul.f32 %v1893_v11, %v2736_v60  ;;  %1920 = vpow2.f32 %v1480_v13  ;;  %v2866_v13 = vld [vmem:[%s2301_s30 + $0x318] sm:$0xff]  ;;  %v1486_v11 = vmul.f32 -1.442695, %v2862_v14 }
  0xe5   : > { %v1897_v38 = vpop.eup %1896  ;;  %1239 = vst [vmem:[%s2400_s17 + $0x268] sm:$0xff] %v1111_v9  ;;  %v1113_v22 = vmul.f32 %v1895_v55, %v2742_v0  ;;  %1922 = vpow2.f32 %v1481_v59  ;;  %v1485_v59 = vmul.f32 -1.442695, %v2859_v56  ;;  %v2875_v9 = vld [vmem:[%s2301_s30 + $0x328] sm:$0xff] }
  0xe6   : > { %v1899_v27 = vpop.eup %1898  ;;  %1240 = vst [vmem:[%s2400_s17 + $0x270] sm:$0xff] %v1112_v28  ;;  %v730_v29 = vadd.f32 1.0, %v1897_v38  ;;  %1924 = vpow2.f32 %v1482_v20  ;;  %v1487_v28 = vmul.f32 -1.442695, %v2866_v13  ;;  %v2880_v38 = vld [vmem:[%s2301_s30 + $0x330] sm:$0xff] }
  0xe7   : > { %v1901_v24 = vpop.eup %1900  ;;  %1241 = vst [vmem:[%s2400_s17 + $0x278] sm:$0xff] %v1113_v22  ;;  %v731_v21 = vadd.f32 1.0, %v1899_v27  ;;  %1926 = vpow2.f32 %v1483_v52  ;;  %v1488_v27 = vmul.f32 -1.442695, %v2870_v3 }
  0xe8   : > { %v1903_v26 = vpop.eup %1902  ;;  %1928 = vrcp.f32 %v730_v29  ;;  %v732_v44 = vadd.f32 1.0, %v1901_v24  ;;  %v2886_v29 = vld [vmem:[%s2301_s30 + $0x338] sm:$0xff] }
  0xe9   : > { %v1905_v32 = vpop.eup %1904  ;;  %1930 = vrcp.f32 %v731_v21  ;;  %v733_v60 = vadd.f32 1.0, %v1903_v26  ;;  %v1489_v21 = vmul.f32 -1.442695, %v2875_v9  ;;  %v2892_v26 = vld [vmem:[%s2301_s30 + $0x340] sm:$0xff] }
  0xea   : > { %v1907_v10 = vpop.eup %1906  ;;  %1932 = vrcp.f32 %v732_v44  ;;  %v734_v34 = vadd.f32 1.0, %v1905_v32  ;;  %v1490_v32 = vmul.f32 -1.442695, %v2880_v38 }
  0xeb   : > { %v1909_v36 = vpop.eup %1908  ;;  %1934 = vrcp.f32 %v733_v60  ;;  %v735_v0 = vadd.f32 1.0, %v1907_v10  ;;  %v2898_v60 = vld [vmem:[%s2301_s30 + $0x348] sm:$0xff] }
  0xec   : > { %v1911_v19 = vpop.eup %1910  ;;  %1936 = vrcp.f32 %v734_v34  ;;  %v736_v1 = vadd.f32 1.0, %v1909_v36  ;;  %v1491_v34 = vmul.f32 -1.442695, %v2886_v29  ;;  %v2904_v36 = vld [vmem:[%s2301_s30 + $0x350] sm:$0xff] }
  0xed   : > { %v1913_v53 = vpop.eup %1912  ;;  %1938 = vrcp.f32 %v735_v0  ;;  %v737_v23 = vadd.f32 1.0, %v1911_v19  ;;  %v1492_v19 = vmul.f32 -1.442695, %v2892_v26 }
  0xee   : > { %v1915_v39 = vpop.eup %1914  ;;  %1940 = vrcp.f32 %v736_v1  ;;  %v738_v25 = vadd.f32 1.0, %v1913_v53  ;;  %v2910_v1 = vld [vmem:[%s2301_s30 + $0x358] sm:$0xff] }
  0xef   : > { %v1917_v2 = vpop.eup %1916  ;;  %1942 = vrcp.f32 %v737_v23  ;;  %v739_v43 = vadd.f32 1.0, %v1915_v39  ;;  %v1493_v23 = vmul.f32 -1.442695, %v2898_v60  ;;  %v2916_v39 = vld [vmem:[%s2301_s30 + $0x360] sm:$0xff] }
  0xf0   : > { %v1919_v41 = vpop.eup %1918  ;;  %1944 = vrcp.f32 %v738_v25  ;;  %v740_v7 = vadd.f32 1.0, %v1917_v2  ;;  %v1494_v2 = vmul.f32 -1.442695, %v2904_v36 }
  0xf1   : > { %v1921_v31 = vpop.eup %1920  ;;  %1946 = vrcp.f32 %v739_v43  ;;  %v741_v62 = vadd.f32 1.0, %v1919_v41  ;;  %v2922_v43 = vld [vmem:[%s2301_s30 + $0x368] sm:$0xff] }
  0xf2   : > { %v1923_v33 = vpop.eup %1922  ;;  %1948 = vrcp.f32 %v740_v7  ;;  %v742_v8 = vadd.f32 1.0, %v1921_v31  ;;  %v1495_v7 = vmul.f32 -1.442695, %v2910_v1  ;;  %v2928_v31 = vld [vmem:[%s2301_s30 + $0x370] sm:$0xff] }
  0xf3   : > { %v1925_v48 = vpop.eup %1924  ;;  %1950 = vrcp.f32 %v741_v62  ;;  %v743_v50 = vadd.f32 1.0, %v1923_v33  ;;  %v1496_v33 = vmul.f32 -1.442695, %v2916_v39 }
  0xf4   : > { %v1927_v54 = vpop.eup %1926  ;;  %1952 = vrcp.f32 %v742_v8  ;;  %v744_v15 = vadd.f32 1.0, %v1925_v48  ;;  %v2934_v8 = vld [vmem:[%s2301_s30 + $0x378] sm:$0xff] }
  0xf5   : > { %v1929_v58 = vpop.eup %1928  ;;  %1954 = vrcp.f32 %v743_v50  ;;  %v745_v45 = vadd.f32 1.0, %v1927_v54  ;;  %v1497_v50 = vmul.f32 -1.442695, %v2922_v43 }
  0xf6   : > { %v1931_v30 = vpop.eup %1930  ;;  %v1114_v20 = vmul.f32 %v1929_v58, %v2760_v61  ;;  %1956 = vrcp.f32 %v744_v15 }
  0xf7   : > { %v1933_v52 = vpop.eup %1932  ;;  %v1115_v55 = vmul.f32 %v1931_v30, %v2763_v4  ;;  %1958 = vrcp.f32 %v745_v45 }
  0xf8   : > { %v1935_v22 = vpop.eup %1934  ;;  %1242 = vst [vmem:[%s2400_s17 + $0x280] sm:$0xff] %v1114_v20  ;;  %v1116_v61 = vmul.f32 %v1933_v52, %v2766_v5  ;;  %1960 = vpow2.f32 %v1484_v17 }
  0xf9   : > { %v1937_v24 = vpop.eup %1936  ;;  %1243 = vst [vmem:[%s2400_s17 + $0x288] sm:$0xff] %v1115_v55  ;;  %v1117_v4 = vmul.f32 %v1935_v22, %v2770_v63  ;;  %1962 = vpow2.f32 %v1485_v59 }
  0xfa   : > { %v1939_v44 = vpop.eup %1938  ;;  %1244 = vst [vmem:[%s2400_s17 + $0x290] sm:$0xff] %v1116_v61  ;;  %v1118_v5 = vmul.f32 %v1937_v24, %v2774_v16  ;;  %1964 = vpow2.f32 %v1486_v11 }
  0xfb   : > { %v1941_v10 = vpop.eup %1940  ;;  %1245 = vst [vmem:[%s2400_s17 + $0x298] sm:$0xff] %v1117_v4  ;;  %v1119_v63 = vmul.f32 %v1939_v44, %v2779_v6  ;;  %1966 = vpow2.f32 %v1487_v28 }
  0xfc   : > { %v1943_v0 = vpop.eup %1942  ;;  %1246 = vst [vmem:[%s2400_s17 + $0x2a0] sm:$0xff] %v1118_v5  ;;  %v1120_v16 = vmul.f32 %v1941_v10, %v2784_v47  ;;  %1968 = vpow2.f32 %v1488_v27 }
  0xfd   : > { %v1945_v53 = vpop.eup %1944  ;;  %1247 = vst [vmem:[%s2400_s17 + $0x2a8] sm:$0xff] %v1119_v63  ;;  %v1121_v6 = vmul.f32 %v1943_v0, %v2790_v37  ;;  %1970 = vpow2.f32 %v1489_v21 }
  0xfe   : > { %v1947_v25 = vpop.eup %1946  ;;  %1248 = vst [vmem:[%s2400_s17 + $0x2b0] sm:$0xff] %v1120_v16  ;;  %v1122_v47 = vmul.f32 %v1945_v53, %v2796_v40  ;;  %1972 = vpow2.f32 %v1490_v32 }
  0xff   : > { %v1949_v41 = vpop.eup %1948  ;;  %1249 = vst [vmem:[%s2400_s17 + $0x2b8] sm:$0xff] %v1121_v6  ;;  %v1123_v37 = vmul.f32 %v1947_v25, %v2802_v35  ;;  %1974 = vpow2.f32 %v1491_v34  ;;  %v2952_v6 = vld [vmem:[%s2301_s30 + $0x380] sm:$0xff] }
 0x100   : > { %v1951_v62 = vpop.eup %1950  ;;  %1250 = vst [vmem:[%s2400_s17 + $0x2c0] sm:$0xff] %v1122_v47  ;;  %v1124_v40 = vmul.f32 %v1949_v41, %v2808_v46  ;;  %1976 = vpow2.f32 %v1492_v19  ;;  %v1498_v46 = vmul.f32 -1.442695, %v2928_v31  ;;  %v2955_v47 = vld [vmem:[%s2301_s30 + $0x388] sm:$0xff] }
 0x101   : > { %v1953_v48 = vpop.eup %1952  ;;  %1251 = vst [vmem:[%s2400_s17 + $0x2c8] sm:$0xff] %v1123_v37  ;;  %v1125_v35 = vmul.f32 %v1951_v62, %v2814_v42  ;;  %1978 = vpow2.f32 %v1493_v23  ;;  %v1499_v42 = vmul.f32 -1.442695, %v2934_v8  ;;  %v2958_v37 = vld [vmem:[%s2301_s30 + $0x390] sm:$0xff] }
 0x102   : > { %v1955_v54 = vpop.eup %1954  ;;  %1252 = vst [vmem:[%s2400_s17 + $0x2d0] sm:$0xff] %v1124_v40  ;;  %v1126_v15 = vmul.f32 %v1953_v48, %v2820_v49  ;;  %1980 = vpow2.f32 %v1494_v2  ;;  %v1500_v40 = vmul.f32 -1.442695, %v2952_v6 }
 0x103   : > { %v1957_v17 = vpop.eup %1956  ;;  %1253 = vst [vmem:[%s2400_s17 + $0x2d8] sm:$0xff] %v1125_v35  ;;  %v1127_v58 = vmul.f32 %v1955_v54, %v2826_v18  ;;  %1982 = vpow2.f32 %v1495_v7  ;;  %v2966_v54 = vld [vmem:[%s2301_s30 + $0x3a0] sm:$0xff] }
 0x104   : > { %v1959_v45 = vpop.eup %1958  ;;  %1254 = vst [vmem:[%s2400_s17 + $0x2e0] sm:$0xff] %v1126_v15  ;;  %v1128_v59 = vmul.f32 %v1957_v17, %v2832_v12  ;;  %1984 = vpow2.f32 %v1496_v33  ;;  %v2962_v33 = vld [vmem:[%s2301_s30 + $0x398] sm:$0xff]  ;;  %v1502_v17 = vmul.f32 -1.442695, %v2958_v37 }
 0x105   : > { %v1961_v30 = vpop.eup %1960  ;;  %1255 = vst [vmem:[%s2400_s17 + $0x2e8] sm:$0xff] %v1127_v58  ;;  %v1129_v49 = vmul.f32 %v1959_v45, %v2838_v57  ;;  %1986 = vpow2.f32 %v1497_v50  ;;  %v1501_v50 = vmul.f32 -1.442695, %v2955_v47  ;;  %v2971_v58 = vld [vmem:[%s2301_s30 + $0x3a8] sm:$0xff] }
 0x106   : > { %v1963_v20 = vpop.eup %1962  ;;  %1256 = vst [vmem:[%s2400_s17 + $0x2f0] sm:$0xff] %v1128_v59  ;;  %v746_v11 = vadd.f32 1.0, %v1961_v30  ;;  %1988 = vpow2.f32 %v1498_v46  ;;  %v1503_v59 = vmul.f32 -1.442695, %v2962_v33  ;;  %v2976_v30 = vld [vmem:[%s2301_s30 + $0x3b0] sm:$0xff] }
 0x107   : > { %v1965_v52 = vpop.eup %1964  ;;  %1257 = vst [vmem:[%s2400_s17 + $0x2f8] sm:$0xff] %v1129_v49  ;;  %v747_v18 = vadd.f32 1.0, %v1963_v20  ;;  %1990 = vpow2.f32 %v1499_v42  ;;  %v1504_v20 = vmul.f32 -1.442695, %v2966_v54 }
 0x108   : > { %v1967_v55 = vpop.eup %1966  ;;  %1992 = vrcp.f32 %v746_v11  ;;  %v748_v28 = vadd.f32 1.0, %v1965_v52  ;;  %v2982_v11 = vld [vmem:[%s2301_s30 + $0x3b8] sm:$0xff] }
 0x109   : > { %v1969_v22 = vpop.eup %1968  ;;  %1994 = vrcp.f32 %v747_v18  ;;  %v749_v12 = vadd.f32 1.0, %v1967_v55  ;;  %v1505_v18 = vmul.f32 -1.442695, %v2971_v58  ;;  %v2988_v55 = vld [vmem:[%s2301_s30 + $0x3c0] sm:$0xff] }
 0x10a   : > { %v1971_v61 = vpop.eup %1970  ;;  %1996 = vrcp.f32 %v748_v28  ;;  %v750_v27 = vadd.f32 1.0, %v1969_v22  ;;  %v1506_v22 = vmul.f32 -1.442695, %v2976_v30 }
 0x10b   : > { %v1973_v24 = vpop.eup %1972  ;;  %1998 = vrcp.f32 %v749_v12  ;;  %v751_v57 = vadd.f32 1.0, %v1971_v61  ;;  %v2994_v12 = vld [vmem:[%s2301_s30 + $0x3c8] sm:$0xff] }
 0x10c   : > { %v1975_v4 = vpop.eup %1974  ;;  %2000 = vrcp.f32 %v750_v27  ;;  %v752_v21 = vadd.f32 1.0, %v1973_v24  ;;  %v1507_v27 = vmul.f32 -1.442695, %v2982_v11  ;;  %v3000_v24 = vld [vmem:[%s2301_s30 + $0x3d0] sm:$0xff] }
 0x10d   : > { %v1977_v44 = vpop.eup %1976  ;;  %2002 = vrcp.f32 %v751_v57  ;;  %v753_v5 = vadd.f32 1.0, %v1975_v4  ;;  %v1508_v4 = vmul.f32 -1.442695, %v2988_v55 }
 0x10e   : > { %v1979_v32 = vpop.eup %1978  ;;  %2004 = vrcp.f32 %v752_v21  ;;  %v754_v10 = vadd.f32 1.0, %v1977_v44  ;;  %v3006_v21 = vld [vmem:[%s2301_s30 + $0x3d8] sm:$0xff] }
 0x10f   : > { %v1981_v63 = vpop.eup %1980  ;;  %2006 = vrcp.f32 %v753_v5  ;;  %v755_v34 = vadd.f32 1.0, %v1979_v32  ;;  %v1509_v5 = vmul.f32 -1.442695, %v2994_v12  ;;  %v3012_v32 = vld [vmem:[%s2301_s30 + $0x3e0] sm:$0xff] }
 0x110   : > { %v1983_v0 = vpop.eup %1982  ;;  %2008 = vrcp.f32 %v754_v10  ;;  %v756_v16 = vadd.f32 1.0, %v1981_v63  ;;  %v1510_v63 = vmul.f32 -1.442695, %v3000_v24 }
 0x111   : > { %v1985_v19 = vpop.eup %1984  ;;  %2010 = vrcp.f32 %v755_v34  ;;  %v757_v53 = vadd.f32 1.0, %v1983_v0  ;;  %v3018_v34 = vld [vmem:[%s2301_s30 + $0x3e8] sm:$0xff] }
 0x112   : > { %v1987_v23 = vpop.eup %1986  ;;  %2012 = vrcp.f32 %v756_v16  ;;  %v758_v25 = vadd.f32 1.0, %v1985_v19  ;;  %v1511_v16 = vmul.f32 -1.442695, %v3006_v21  ;;  %v3024_v19 = vld [vmem:[%s2301_s30 + $0x3f0] sm:$0xff] }
 0x113   : > { %v1989_v2 = vpop.eup %1988  ;;  %2014 = vrcp.f32 %v757_v53  ;;  %v759_v41 = vadd.f32 1.0, %v1987_v23  ;;  %v1512_v23 = vmul.f32 -1.442695, %v3012_v32 }
 0x114   : > { %v1991_v7 = vpop.eup %1990  ;;  %2016 = vrcp.f32 %v758_v25  ;;  %v760_v62 = vadd.f32 1.0, %v1989_v2  ;;  %v3030_v25 = vld [vmem:[%s2301_s30 + $0x3f8] sm:$0xff] }
 0x115   : > { %v1993_v48 = vpop.eup %1992  ;;  %2018 = vrcp.f32 %v759_v41  ;;  %v761_v35 = vadd.f32 1.0, %v1991_v7  ;;  %v1513_v41 = vmul.f32 -1.442695, %v3018_v34 }
 0x116   : > { %v1995_v15 = vpop.eup %1994  ;;  %v1130_v46 = vmul.f32 %v1993_v48, %v2856_v51  ;;  %2020 = vrcp.f32 %v760_v62 }
 0x117   : > { %v1997_v42 = vpop.eup %1996  ;;  %v1131_v45 = vmul.f32 %v1995_v15, %v2859_v56  ;;  %2022 = vrcp.f32 %v761_v35 }
 0x118   : > { %v1999_v49 = vpop.eup %1998  ;;  %1258 = vst [vmem:[%s2400_s17 + $0x300] sm:$0xff] %v1130_v46  ;;  %v1132_v51 = vmul.f32 %v1997_v42, %v2862_v14  ;;  %2024 = vpow2.f32 %v1500_v40 }
 0x119   : > { %v2001_v52 = vpop.eup %2000  ;;  %1259 = vst [vmem:[%s2400_s17 + $0x308] sm:$0xff] %v1131_v45  ;;  %v1133_v56 = vmul.f32 %v1999_v49, %v2866_v13  ;;  %2026 = vpow2.f32 %v1501_v50 }
 0x11a   : > { %v2003_v28 = vpop.eup %2002  ;;  %1260 = vst [vmem:[%s2400_s17 + $0x310] sm:$0xff] %v1132_v51  ;;  %v1134_v14 = vmul.f32 %v2001_v52, %v2870_v3  ;;  %2028 = vpow2.f32 %v1502_v17 }
 0x11b   : > { %v2005_v61 = vpop.eup %2004  ;;  %1261 = vst [vmem:[%s2400_s17 + $0x318] sm:$0xff] %v1133_v56  ;;  %v1135_v13 = vmul.f32 %v2003_v28, %v2875_v9  ;;  %2030 = vpow2.f32 %v1503_v59 }
 0x11c   : > { %v2007_v57 = vpop.eup %2006  ;;  %1262 = vst [vmem:[%s2400_s17 + $0x320] sm:$0xff] %v1134_v14  ;;  %v1136_v3 = vmul.f32 %v2005_v61, %v2880_v38  ;;  %2032 = vpow2.f32 %v1504_v20 }
 0x11d   : > { %v2009_v44 = vpop.eup %2008  ;;  %1263 = vst [vmem:[%s2400_s17 + $0x328] sm:$0xff] %v1135_v13  ;;  %v1137_v9 = vmul.f32 %v2007_v57, %v2886_v29  ;;  %2034 = vpow2.f32 %v1505_v18 }
 0x11e   : > { %v2011_v10 = vpop.eup %2010  ;;  %1264 = vst [vmem:[%s2400_s17 + $0x330] sm:$0xff] %v1136_v3  ;;  %v1138_v38 = vmul.f32 %v2009_v44, %v2892_v26  ;;  %2036 = vpow2.f32 %v1506_v22 }
 0x11f   : > { %v2013_v0 = vpop.eup %2012  ;;  %1265 = vst [vmem:[%s2400_s17 + $0x338] sm:$0xff] %v1137_v9  ;;  %v1139_v29 = vmul.f32 %v2011_v10, %v2898_v60  ;;  %2038 = vpow2.f32 %v1507_v27 }
 0x120   : > { %v2015_v53 = vpop.eup %2014  ;;  %1266 = vst [vmem:[%s2400_s17 + $0x340] sm:$0xff] %v1138_v38  ;;  %v1140_v26 = vmul.f32 %v2013_v0, %v2904_v36  ;;  %2040 = vpow2.f32 %v1508_v4  ;;  %v1514_v36 = vmul.f32 -1.442695, %v3024_v19 }
 0x121   : > { %v2017_v2 = vpop.eup %2016  ;;  %1267 = vst [vmem:[%s2400_s17 + $0x348] sm:$0xff] %v1139_v29  ;;  %v1141_v60 = vmul.f32 %v2015_v53, %v2910_v1  ;;  %2042 = vpow2.f32 %v1509_v5  ;;  %v1515_v1 = vmul.f32 -1.442695, %v3030_v25 }
 0x122   : > { %v2019_v7 = vpop.eup %2018  ;;  %1268 = vst [vmem:[%s2400_s17 + $0x350] sm:$0xff] %v1140_v26  ;;  %v1142_v62 = vmul.f32 %v2017_v2, %v2916_v39  ;;  %2044 = vpow2.f32 %v1510_v63 }
 0x123   : > { %v2021_v40 = vpop.eup %2020  ;;  %1269 = vst [vmem:[%s2400_s17 + $0x358] sm:$0xff] %v1141_v60  ;;  %v1143_v48 = vmul.f32 %v2019_v7, %v2922_v43  ;;  %2046 = vpow2.f32 %v1511_v16 }
 0x124   : > { %v2023_v35 = vpop.eup %2022  ;;  %1270 = vst [vmem:[%s2400_s17 + $0x360] sm:$0xff] %v1142_v62  ;;  %v1144_v50 = vmul.f32 %v2021_v40, %v2928_v31  ;;  %2048 = vpow2.f32 %v1512_v23 }
 0x125   : > { %v2025_v15 = vpop.eup %2024  ;;  %1271 = vst [vmem:[%s2400_s17 + $0x368] sm:$0xff] %v1143_v48  ;;  %v1145_v39 = vmul.f32 %v2023_v35, %v2934_v8  ;;  %2050 = vpow2.f32 %v1513_v41 }
 0x126   : > { %v2027_v46 = vpop.eup %2026  ;;  %1272 = vst [vmem:[%s2400_s17 + $0x370] sm:$0xff] %v1144_v50  ;;  %v762_v17 = vadd.f32 1.0, %v2025_v15  ;;  %2052 = vpow2.f32 %v1514_v36 }
 0x127   : > { %v2029_v42 = vpop.eup %2028  ;;  %1273 = vst [vmem:[%s2400_s17 + $0x378] sm:$0xff] %v1145_v39  ;;  %v763_v43 = vadd.f32 1.0, %v2027_v46  ;;  %2054 = vpow2.f32 %v1515_v1 }
 0x128   : > { %v2031_v45 = vpop.eup %2030  ;;  %2056 = vrcp.f32 %v762_v17  ;;  %v764_v59 = vadd.f32 1.0, %v2029_v42 }
 0x129   : > { %v2033_v49 = vpop.eup %2032  ;;  %2058 = vrcp.f32 %v763_v43  ;;  %v765_v31 = vadd.f32 1.0, %v2031_v45 }
 0x12a   : > { %v2035_v51 = vpop.eup %2034  ;;  %2060 = vrcp.f32 %v764_v59  ;;  %v766_v20 = vadd.f32 1.0, %v2033_v49 }
 0x12b   : > { %v2037_v52 = vpop.eup %2036  ;;  %2062 = vrcp.f32 %v765_v31  ;;  %v767_v8 = vadd.f32 1.0, %v2035_v51 }
 0x12c   : > { %v2039_v56 = vpop.eup %2038  ;;  %2064 = vrcp.f32 %v766_v20  ;;  %v768_v18 = vadd.f32 1.0, %v2037_v52 }
 0x12d   : > { %v2041_v28 = vpop.eup %2040  ;;  %2066 = vrcp.f32 %v767_v8  ;;  %v769_v14 = vadd.f32 1.0, %v2039_v56 }
 0x12e   : > { %v2043_v22 = vpop.eup %2042  ;;  %2068 = vrcp.f32 %v768_v18  ;;  %v770_v61 = vadd.f32 1.0, %v2041_v28 }
 0x12f   : > { %v2045_v13 = vpop.eup %2044  ;;  %2070 = vrcp.f32 %v769_v14  ;;  %v771_v27 = vadd.f32 1.0, %v2043_v22 }
 0x130   : > { %v2047_v57 = vpop.eup %2046  ;;  %2072 = vrcp.f32 %v770_v61  ;;  %v772_v3 = vadd.f32 1.0, %v2045_v13 }
 0x131   : > { %v2049_v4 = vpop.eup %2048  ;;  %2074 = vrcp.f32 %v771_v27  ;;  %v773_v44 = vadd.f32 1.0, %v2047_v57 }
 0x132   : > { %v2051_v9 = vpop.eup %2050  ;;  %2076 = vrcp.f32 %v772_v3  ;;  %v774_v5 = vadd.f32 1.0, %v2049_v4 }
 0x133   : > { %v2053_v10 = vpop.eup %2052  ;;  %2078 = vrcp.f32 %v773_v44  ;;  %v775_v38 = vadd.f32 1.0, %v2051_v9 }
 0x134   : > { %v2055_v63 = vpop.eup %2054  ;;  %2080 = vrcp.f32 %v774_v5  ;;  %v776_v0 = vadd.f32 1.0, %v2053_v10 }
 0x135   : > { %v2057_v29 = vpop.eup %2056  ;;  %2082 = vrcp.f32 %v775_v38  ;;  %v777_v16 = vadd.f32 1.0, %v2055_v63 }
 0x136   : > { %v2059_v53 = vpop.eup %2058  ;;  %v1146_v26 = vmul.f32 %v2057_v29, %v2952_v6  ;;  %2084 = vrcp.f32 %v776_v0 }
 0x137   : > { %v2061_v23 = vpop.eup %2060  ;;  %v1147_v2 = vmul.f32 %v2059_v53, %v2955_v47  ;;  %2086 = vrcp.f32 %v777_v16 }
 0x138   : > { %v2063_v60 = vpop.eup %2062  ;;  %1274 = vst [vmem:[%s2400_s17 + $0x380] sm:$0xff] %v1146_v26  ;;  %v1148_v41 = vmul.f32 %v2061_v23, %v2958_v37 }
 0x139   : > { %v2065_v7 = vpop.eup %2064  ;;  %1275 = vst [vmem:[%s2400_s17 + $0x388] sm:$0xff] %v1147_v2  ;;  %v1149_v62 = vmul.f32 %v2063_v60, %v2962_v33 }
 0x13a   : > { %v2067_v36 = vpop.eup %2066  ;;  %1276 = vst [vmem:[%s2400_s17 + $0x390] sm:$0xff] %v1148_v41  ;;  %v1150_v6 = vmul.f32 %v2065_v7, %v2966_v54 }
 0x13b   : > { %v2069_v40 = vpop.eup %2068  ;;  %1277 = vst [vmem:[%s2400_s17 + $0x398] sm:$0xff] %v1149_v62  ;;  %v1151_v47 = vmul.f32 %v2067_v36, %v2971_v58 }
 0x13c   : > { %v2071_v48 = vpop.eup %2070  ;;  %1278 = vst [vmem:[%s2400_s17 + $0x3a0] sm:$0xff] %v1150_v6  ;;  %v1152_v37 = vmul.f32 %v2069_v40, %v2976_v30 }
 0x13d   : > { %v2073_v1 = vpop.eup %2072  ;;  %1279 = vst [vmem:[%s2400_s17 + $0x3a8] sm:$0xff] %v1151_v47  ;;  %v1153_v33 = vmul.f32 %v2071_v48, %v2982_v11 }
 0x13e   : > { %v2075_v35 = vpop.eup %2074  ;;  %1280 = vst [vmem:[%s2400_s17 + $0x3b0] sm:$0xff] %v1152_v37  ;;  %v1154_v54 = vmul.f32 %v2073_v1, %v2988_v55 }
 0x13f   : > { %v2077_v50 = vpop.eup %2076  ;;  %1281 = vst [vmem:[%s2400_s17 + $0x3b8] sm:$0xff] %v1153_v33  ;;  %v1155_v58 = vmul.f32 %v2075_v35, %v2994_v12 }
 0x140   : > { %v2079_v15 = vpop.eup %2078  ;;  %1282 = vst [vmem:[%s2400_s17 + $0x3c0] sm:$0xff] %v1154_v54  ;;  %v1156_v30 = vmul.f32 %v2077_v50, %v3000_v24 }
 0x141   : > { %v2081_v39 = vpop.eup %2080  ;;  %1283 = vst [vmem:[%s2400_s17 + $0x3c8] sm:$0xff] %v1155_v58  ;;  %v1157_v11 = vmul.f32 %v2079_v15, %v3006_v21 }
 0x142   : > { %v2083_v55 = vpop.eup %2082  ;;  %1284 = vst [vmem:[%s2400_s17 + $0x3d0] sm:$0xff] %v1156_v30  ;;  %v1158_v46 = vmul.f32 %v2081_v39, %v3012_v32 }
 0x143   : > { %v2085_v12 = vpop.eup %2084  ;;  %1285 = vst [vmem:[%s2400_s17 + $0x3d8] sm:$0xff] %v1157_v11  ;;  %v1159_v17 = vmul.f32 %v2083_v55, %v3018_v34 }
 0x144   : > { %v2087_v24 = vpop.eup %2086  ;;  %1286 = vst [vmem:[%s2400_s17 + $0x3e0] sm:$0xff] %v1158_v46  ;;  %v1160_v42 = vmul.f32 %v2085_v12, %v3024_v19 }
 0x145   : > { %1287 = vst [vmem:[%s2400_s17 + $0x3e8] sm:$0xff] %v1159_v17  ;;  %v1161_v21 = vmul.f32 %v2087_v24, %v3030_v25 }
 0x146   : > { %1288 = vst [vmem:[%s2400_s17 + $0x3f0] sm:$0xff] %v1160_v42 }
 0x147   : > { %1289 = vst [vmem:[%s2400_s17 + $0x3f8] sm:$0xff] %v1161_v21 }
 0x148   : > { %2129 = shalt.err (!%p2126_p10)
}
 0x149   : > { %s2130_s13 = scalar_lea.hbm %s3080_s10, 16384  ;;  %s2134_s20 = scalar_lea.hbm %s3130_s1, 32768 }
 0x14a   : > { %p2131_p0 = scmp.ne.s32.totalorder %s3080_s10, %s2130_s13  ;;  %p2135_p1 = scmp.lt.s32.totalorder %s3080_s10, %s3130_s1 }
 0x14b   : > { %p2136_p3 = scmp.lt.s32.totalorder %s2134_s20, %s2130_s13 }
 0x14c   : > { %p2132_p2 = pnand %p2131_p0, %p3139_p12 }
 0x14d   : > { %p2137_p6 = por %p2136_p3, %p2135_p1 }
 0x14e   : > { %p2133_p9 = pneg %p2132_p2 }
 0x150   : > { %p2138_p11 = pnand %p2137_p6, %p2133_p9 }
 0x152   : > { %2141 = shalt.err (!%p2138_p11)
}
 0x153   : > { %s2186_s24 = smov 2048   ;;  %s2187_s26 = smov 128  }
 0x154   : > { %1528 = dma.vmem_to_hbm [thread:$0]  (%p3139_p12), %s3082_s27, 16384, %s3080_s10, %s1291_s2, %s2186_s24, %s2186_s24, %s2187_s26  }
 0x155 PF: > { %s1320_s30 = sand.u32 1, %s2168_s6   ;;  %p3140_p13 = scmp.ne.s32.totalorder %s3136_s19, 0 }
 0x156   : > { %p3141_p4 = scmp.ge.s32.totalorder %s2180_s9, 2  ;;  %s1321_s17 = scalar_lea.sflag [#allocation4], %s1320_s30 }
 0x158   : > { %p1535_p5 = pnand %p3141_p4, %p3140_p13 }
 0x15a   : > { %p1536_p7 = pneg %p1535_p5 }
 0x15c   : > { %2163 = dma.done.wait (%p1536_p7), %s1321_s17, 16384  }
 0x15d   : > { %2165 = vsyncadd (%p1536_p7), %s1321_s17, 4294950912  ;;  %p14_p8 = scmp.ge.s32.totalorder %s2223_s12, 4   ;;  %s3142_s6 = smov %s2172_s7 }
 0x15e   : > { %s3143_s7 = smov %s2176_s8  ;;  %s3144_s8 = smov %s2235_s15 }
 0x15f   : > { %s3145_s9 = smov %s2223_s12  ;;  %16 = sbr.rel (!%p14_p8) target bundleno = 5 (0x5), region = 69 }
 0x164   :  { %1326 = vsyncpa [#allocation3], 1 }
 0x165   :  { %1328 = vsyncpa [#allocation3 + $0x1], 1 }
 0x166   :  { %1329 = vsyncpa [#allocation4], 1 }
 0x167   :  { %1331 = vsyncpa [#allocation4 + $0x1], 1 }

</bundles_post_ra>
